<compile_context>
chip_gen: v5e
topology: v5e:2x2
jax: 0.10.0
libtpu: 0.0.40
codegen_flags: <defaults>
</compile_context>

<pallas_src>
import functools

import jax
import jax.numpy as jnp
from jax import lax
from jax.experimental import pallas as pl
from jax.experimental.pallas import tpu as pltpu


def gmu_kernel(c1_ref, c2_ref, c3_ref, w_ref, o_ref):
    D = o_ref.shape[-1]
    mxu_dtype = w_ref.dtype

    c1 = c1_ref[...].astype(mxu_dtype)
    c2 = c2_ref[...].astype(mxu_dtype)
    c3 = c3_ref[...].astype(mxu_dtype)

    # Packed weight column layout (lane-aligned, D a multiple of 128):
    #   w[:, 0:4D]  = [ Wz1^T | Wz2^T[:D]  | Wz3^T[:D]    | Wt1^T ]   (consumed by c1)
    #   w[:, 4D:7D] = [ Wz2^T[D:] | Wz3^T[D:2D] | Wt2^T ]             (consumed by c2)
    #   w[:, 7D:9D] = [ Wz3^T[2D:] | Wt3^T ]                          (consumed by c3)
    p1 = jnp.dot(c1, w_ref[:, 0:4 * D], preferred_element_type=jnp.float32)       # (tm, 4D)
    p2 = jnp.dot(c2, w_ref[:, 4 * D:7 * D], preferred_element_type=jnp.float32)   # (tm, 3D)
    p3 = jnp.dot(c3, w_ref[:, 7 * D:9 * D], preferred_element_type=jnp.float32)   # (tm, 2D)

    z1 = jax.nn.sigmoid(p1[:, 0:D])
    z2 = jax.nn.sigmoid(p1[:, D:2 * D] + p2[:, 0:D])
    z3 = jax.nn.sigmoid(p1[:, 2 * D:3 * D] + p2[:, D:2 * D] + p3[:, 0:D])
    h1 = jnp.tanh(p1[:, 3 * D:4 * D])
    h2 = jnp.tanh(p2[:, 2 * D:3 * D])
    h3 = jnp.tanh(p3[:, D:2 * D])

    o_ref[...] = (h1 * z1 + h2 * z2 + h3 * z3).astype(o_ref.dtype)


def pack_gmu_weights(params, mxu_dtype=jnp.bfloat16):
    """Pack the six PyTorch-layout (out,in) weights into one (D, 9D) MXU matrix.

    Call ONCE (e.g. at parameter load time) and reuse across forward calls so
    the transposes / concatenates / cast are fully amortized.
    """
    Wz1, Wt1, Wz2, Wt2, Wz3, Wt3 = params
    D = Wz1.shape[0]
    Wz2t, Wz3t = Wz2.T, Wz3.T                                          # (2D,D), (3D,D)
    w1 = jnp.concatenate([Wz1.T, Wz2t[:D], Wz3t[:D], Wt1.T], axis=1)   # (D, 4D)
    w2 = jnp.concatenate([Wz2t[D:], Wz3t[D:2 * D], Wt2.T], axis=1)     # (D, 3D)
    w3 = jnp.concatenate([Wz3t[2 * D:], Wt3.T], axis=1)                # (D, 2D)
    return jnp.concatenate([w1, w2, w3], axis=1).astype(mxu_dtype)     # (D, 9D)


def gmu_pallas(c1, c2, c3, packed_w, *, tile_m=512, out_dtype=None):
    """GMU forward.  c1/c2/c3: (B, T, D) in their native (ideally bf16) dtype;
    packed_w: output of pack_gmu_weights (its dtype is the MXU dtype)."""
    B, T, D = c1.shape
    assert packed_w.shape == (D, 9 * D), "packed_w must be pack_gmu_weights output"
    if out_dtype is None:
        out_dtype = c1.dtype
    M = B * T

    # Reshape only (no dtype cast, no pad) -> activations stream in native dtype.
    c1f = c1.reshape(M, D)
    c2f = c2.reshape(M, D)
    c3f = c3.reshape(M, D)

    # Tile over rows: clamp to M, keep the sublane dim a multiple of 8 when tiling.
    tm = min(tile_m, M)
    if tm < M:
        tm = max(8, (tm // 8) * 8)
    grid = (pl.cdiv(M, tm),)

    in_bytes = M * D * (c1f.dtype.itemsize + c2f.dtype.itemsize + c3f.dtype.itemsize)
    w_bytes = D * 9 * D * packed_w.dtype.itemsize
    out_bytes = M * D * jnp.dtype(out_dtype).itemsize
    cost = pl.CostEstimate(
        flops=2 * 9 * M * D * D,
        transcendentals=6 * M * D,
        bytes_accessed=in_bytes + w_bytes + out_bytes,
    )

    row_spec = pl.BlockSpec((tm, D), lambda i: (i, 0))
    out = pl.pallas_call(
        gmu_kernel,
        out_shape=jax.ShapeDtypeStruct((M, D), out_dtype),
        grid=grid,
        in_specs=[row_spec, row_spec, row_spec,
                  pl.BlockSpec((D, 9 * D), lambda i: (0, 0))],   # resident weights
        out_specs=row_spec,
        compiler_params=pltpu.CompilerParams(
            dimension_semantics=("parallel",)),
        cost_estimate=cost,
    )(c1f, c2f, c3f, packed_w)

    return out.reshape(B, T, D)


def gmu_ref(c1, c2, c3, params):
    """Pure-JAX reference mirroring the PyTorch forward (f32, HIGHEST precision)."""
    Wz1, Wt1, Wz2, Wt2, Wz3, Wt3 = params
    dot = functools.partial(jnp.dot, precision=lax.Precision.HIGHEST)
    z1 = jax.nn.sigmoid(dot(c1, Wz1.T))
    h1 = jnp.tanh(dot(c1, Wt1.T))
    z2 = jax.nn.sigmoid(dot(jnp.concatenate([c1, c2], axis=2), Wz2.T))
    h2 = jnp.tanh(dot(c2, Wt2.T))
    z3 = jax.nn.sigmoid(dot(jnp.concatenate([c1, c2, c3], axis=2), Wz3.T))
    h3 = jnp.tanh(dot(c3, Wt3.T))
    return h1 * z1 + h2 * z2 + h3 * z3


def init_params(key, D):
    """PyTorch nn.Linear(bias=False) default init: U(-1/sqrt(fan_in), 1/sqrt(fan_in))."""
    ks = jax.random.split(key, 6)

    def lin(k, out_f, in_f):
        bound = 1.0 / jnp.sqrt(jnp.float32(in_f))
        return jax.random.uniform(k, (out_f, in_f), jnp.float32, -bound, bound)

    Wz1 = lin(ks[0], D, D)
    Wt1 = lin(ks[1], D, D)
    Wz2 = lin(ks[2], D, 2 * D)
    Wt2 = lin(ks[3], D, D)
    Wz3 = lin(ks[4], D, 3 * D)
    Wt3 = lin(ks[5], D, D)
    return (Wz1, Wt1, Wz2, Wt2, Wz3, Wt3)


if __name__ == "__main__":
    key = jax.random.PRNGKey(0)
    kc1, kc2, kc3, kp = jax.random.split(key, 4)

    B, T, D = 2, 64, 128                        # hp.compute_dim = 128 (lane-aligned)
    c1 = jax.random.normal(kc1, (B, T, D), jnp.float32)
    c2 = jax.random.normal(kc2, (B, T, D), jnp.float32)
    c3 = jax.random.normal(kc3, (B, T, D), jnp.float32)
    params = init_params(kp, D)

    # 1) f32 MXU path — tight validation of the packed-weight / partial-sum logic.
    w_f32 = pack_gmu_weights(params, mxu_dtype=jnp.float32)
    out_f32 = jax.block_until_ready(gmu_pallas(c1, c2, c3, w_f32, out_dtype=jnp.float32))
    ref_f32 = gmu_ref(c1, c2, c3, params)
    assert out_f32.shape == (B, T, D)
    assert jnp.allclose(out_f32, ref_f32, atol=2e-3, rtol=2e-3), "f32 path mismatch"

    # 2) Production path — bf16-streamed activations, bf16 MXU, bf16 output.
    w_bf16 = pack_gmu_weights(params, mxu_dtype=jnp.bfloat16)
    c1b, c2b, c3b = (x.astype(jnp.bfloat16) for x in (c1, c2, c3))
    out_bf16 = jax.block_until_ready(gmu_pallas(c1b, c2b, c3b, w_bf16))
    ref_b = gmu_ref(c1b.astype(jnp.float32), c2b.astype(jnp.float32),
                    c3b.astype(jnp.float32), params)
    max_err = jnp.max(jnp.abs(out_bf16.astype(jnp.float32) - ref_b))
    assert out_bf16.dtype == jnp.bfloat16
    assert max_err < 5e-2, f"bf16 path mismatch (max abs err {max_err})"

    print("KERNEL_OK")
</pallas_src>

<mosaic_0001>
module attributes {stable_mosaic.version = 11 : i64} {
  func.func @gmu_kernel(%arg0: i32, %arg1: memref<128x128xf32, #tpu.memory_space<vmem>>, %arg2: memref<128x128xf32, #tpu.memory_space<vmem>>, %arg3: memref<128x128xf32, #tpu.memory_space<vmem>>, %arg4: memref<128x1152xf32, #tpu.memory_space<vmem>>, %arg5: memref<128x128xf32, #tpu.memory_space<vmem>>) attributes {dimension_semantics = [#tpu.dimension_semantics<parallel>], iteration_bounds = array<i64: 1>, scalar_prefetch = 0 : i64, scratch_operands = 0 : i64, tpu.core_type = #tpu.core_type<tc>, window_params = [{transform_indices = @transform_0, window_bounds = array<i64: 128, 128>}, {transform_indices = @transform_1, window_bounds = array<i64: 128, 128>}, {transform_indices = @transform_2, window_bounds = array<i64: 128, 128>}, {pipeline_mode = #tpu.pipeline_mode<synchronous>, transform_indices = @transform_3, window_bounds = array<i64: 128, 1152>}, {transform_indices = @transform_4, window_bounds = array<i64: 128, 128>}]} {
    %c0 = arith.constant 0 : index
    %c0_0 = arith.constant 0 : index
    %0 = vector.load %arg1[%c0, %c0_0] : memref<128x128xf32, #tpu.memory_space<vmem>>, vector<128x128xf32>
    %c0_1 = arith.constant 0 : index
    %c0_2 = arith.constant 0 : index
    %1 = vector.load %arg2[%c0_1, %c0_2] : memref<128x128xf32, #tpu.memory_space<vmem>>, vector<128x128xf32>
    %c0_3 = arith.constant 0 : index
    %c0_4 = arith.constant 0 : index
    %2 = vector.load %arg3[%c0_3, %c0_4] : memref<128x128xf32, #tpu.memory_space<vmem>>, vector<128x128xf32>
    %c0_5 = arith.constant 0 : index
    %c0_6 = arith.constant 0 : index
    %3 = vector.load %arg4[%c0_5, %c0_6] : memref<128x1152xf32, #tpu.memory_space<vmem>>, vector<128x512xf32>
    %cst = arith.constant dense<0.000000e+00> : vector<128x512xf32>
    %4 = tpu.matmul %0, %3, %cst {dimension_numbers = #tpu.dot_dimension_numbers<[1], [0], [0], [1], [0, 0, 1, 1], [], []>} : vector<128x128xf32>, vector<128x512xf32>, vector<128x512xf32> -> vector<128x512xf32>
    %c0_7 = arith.constant 0 : index
    %c512 = arith.constant 512 : index
    %5 = vector.load %arg4[%c0_7, %c512] : memref<128x1152xf32, #tpu.memory_space<vmem>>, vector<128x384xf32>
    %cst_8 = arith.constant dense<0.000000e+00> : vector<128x384xf32>
    %6 = tpu.matmul %1, %5, %cst_8 {dimension_numbers = #tpu.dot_dimension_numbers<[1], [0], [0], [1], [0, 0, 1, 1], [], []>} : vector<128x128xf32>, vector<128x384xf32>, vector<128x384xf32> -> vector<128x384xf32>
    %c0_9 = arith.constant 0 : index
    %c896 = arith.constant 896 : index
    %7 = vector.load %arg4[%c0_9, %c896] : memref<128x1152xf32, #tpu.memory_space<vmem>>, vector<128x256xf32>
    %cst_10 = arith.constant dense<0.000000e+00> : vector<128x256xf32>
    %8 = tpu.matmul %2, %7, %cst_10 {dimension_numbers = #tpu.dot_dimension_numbers<[1], [0], [0], [1], [0, 0, 1, 1], [], []>} : vector<128x128xf32>, vector<128x256xf32>, vector<128x256xf32> -> vector<128x256xf32>
    %9 = vector.extract_strided_slice %4 {offsets = [0, 0], sizes = [128, 128], strides = [1, 1]} : vector<128x512xf32> to vector<128x128xf32>
    %10 = arith.negf %9 : vector<128x128xf32>
    %11 = math.exp %10 : vector<128x128xf32>
    %cst_11 = arith.constant 1.000000e+00 : f32
    %12 = vector.broadcast %cst_11 : f32 to vector<128x128xf32>
    %13 = arith.addf %12, %11 : vector<128x128xf32>
    %14 = arith.divf %12, %13 : vector<128x128xf32>
    %15 = vector.extract_strided_slice %4 {offsets = [0, 128], sizes = [128, 128], strides = [1, 1]} : vector<128x512xf32> to vector<128x128xf32>
    %16 = vector.extract_strided_slice %6 {offsets = [0, 0], sizes = [128, 128], strides = [1, 1]} : vector<128x384xf32> to vector<128x128xf32>
    %17 = arith.addf %15, %16 : vector<128x128xf32>
    %18 = arith.negf %17 : vector<128x128xf32>
    %19 = math.exp %18 : vector<128x128xf32>
    %cst_12 = arith.constant 1.000000e+00 : f32
    %20 = vector.broadcast %cst_12 : f32 to vector<128x128xf32>
    %21 = arith.addf %20, %19 : vector<128x128xf32>
    %22 = arith.divf %20, %21 : vector<128x128xf32>
    %23 = vector.extract_strided_slice %4 {offsets = [0, 256], sizes = [128, 128], strides = [1, 1]} : vector<128x512xf32> to vector<128x128xf32>
    %24 = vector.extract_strided_slice %6 {offsets = [0, 128], sizes = [128, 128], strides = [1, 1]} : vector<128x384xf32> to vector<128x128xf32>
    %25 = arith.addf %23, %24 : vector<128x128xf32>
    %26 = vector.extract_strided_slice %8 {offsets = [0, 0], sizes = [128, 128], strides = [1, 1]} : vector<128x256xf32> to vector<128x128xf32>
    %27 = arith.addf %25, %26 : vector<128x128xf32>
    %28 = arith.negf %27 : vector<128x128xf32>
    %29 = math.exp %28 : vector<128x128xf32>
    %cst_13 = arith.constant 1.000000e+00 : f32
    %30 = vector.broadcast %cst_13 : f32 to vector<128x128xf32>
    %31 = arith.addf %30, %29 : vector<128x128xf32>
    %32 = arith.divf %30, %31 : vector<128x128xf32>
    %33 = vector.extract_strided_slice %4 {offsets = [0, 384], sizes = [128, 128], strides = [1, 1]} : vector<128x512xf32> to vector<128x128xf32>
    %34 = math.tanh %33 : vector<128x128xf32>
    %35 = vector.extract_strided_slice %6 {offsets = [0, 256], sizes = [128, 128], strides = [1, 1]} : vector<128x384xf32> to vector<128x128xf32>
    %36 = math.tanh %35 : vector<128x128xf32>
    %37 = vector.extract_strided_slice %8 {offsets = [0, 128], sizes = [128, 128], strides = [1, 1]} : vector<128x256xf32> to vector<128x128xf32>
    %38 = math.tanh %37 : vector<128x128xf32>
    %39 = arith.mulf %34, %14 : vector<128x128xf32>
    %40 = arith.mulf %36, %22 : vector<128x128xf32>
    %41 = arith.addf %39, %40 : vector<128x128xf32>
    %42 = arith.mulf %38, %32 : vector<128x128xf32>
    %43 = arith.addf %41, %42 : vector<128x128xf32>
    %c0_14 = arith.constant 0 : index
    %c0_15 = arith.constant 0 : index
    %44 = vector.load %arg5[%c0_14, %c0_15] : memref<128x128xf32, #tpu.memory_space<vmem>>, vector<128x128xf32>
    tpu.vector_store %arg5[%c0_14, %c0_15], %43 {strides = array<i32>} : memref<128x128xf32, #tpu.memory_space<vmem>>, vector<128x128xf32>,
    return
  }
  func.func @transform_0(%arg0: i32) -> (i32, i32) {
    %c0_i32 = arith.constant 0 : i32
    %c0_i32_0 = arith.constant 0 : i32
    return %arg0, %c0_i32 : i32, i32
  }
  func.func @transform_1(%arg0: i32) -> (i32, i32) {
    %c0_i32 = arith.constant 0 : i32
    %c0_i32_0 = arith.constant 0 : i32
    return %arg0, %c0_i32 : i32, i32
  }
  func.func @transform_2(%arg0: i32) -> (i32, i32) {
    %c0_i32 = arith.constant 0 : i32
    %c0_i32_0 = arith.constant 0 : i32
    return %arg0, %c0_i32 : i32, i32
  }
  func.func @transform_3(%arg0: i32) -> (i32, i32) {
    %c0_i32 = arith.constant 0 : i32
    %c0_i32_0 = arith.constant 0 : i32
    %c0_i32_1 = arith.constant 0 : i32
    return %c0_i32, %c0_i32_0 : i32, i32
  }
  func.func @transform_4(%arg0: i32) -> (i32, i32) {
    %c0_i32 = arith.constant 0 : i32
    %c0_i32_0 = arith.constant 0 : i32
    return %arg0, %c0_i32 : i32, i32
  }
}

</mosaic_0001>

<bundles_post_ra>
// kernel: tpu_custom_call.1
= control target key start
LH: loop header
LB: loop body
LE: loop exit
PB: predicated region body
PF: predicated region fallthrough
CT: control target
= control target key end

     0   :  { %9 = vsyncpa [#allocation3], 0  ;;  %s4316_s0 = inlined_call_operand.hbm [shape: f32[128,128], index: 0, kind: input, shape index: {}]   ;;  %s4317_s1 = inlined_call_operand.hbm [shape: f32[128,128], index: 1, kind: input, shape index: {}]   ;;  %s4318_s2 = inlined_call_operand.hbm [shape: f32[128,128], index: 2, kind: input, shape index: {}]   ;;  %s4319_s3 = inlined_call_operand.hbm [shape: f32[128,1152], index: 3, kind: input, shape index: {}]   ;;  %s4320_s4 = inlined_call_operand.hbm [shape: f32[128,128], index: 4, kind: output, shape index: {}]  }
   0x1   :  { %10 = vsyncpa [#allocation6], 0 }
   0x2   :  { %11 = vsyncpa [#allocation9], 0 }
   0x3   :  { %12 = vsyncpa [#allocation4], 0  ;;  %s30_s17 = sshll.u32 %s4317_s1, 4  ;;  %s2506_s18 = smov [#allocation5]   ;;  %s31_s17 = int_to_ptr.hbm [resolvable:$true] %s30_s17 }
   0x4   :  { %s32_s19 = sshll.u32 %s2506_s18, 4  ;;  %s17_s22 = sshll.u32 %s4316_s0, 4  ;;  %s33_s19 = int_to_ptr.vmem [resolvable:$true] %s32_s19  ;;  %s18_s22 = int_to_ptr.hbm [resolvable:$true] %s17_s22 }
   0x5   :  { %s2507_s23 = smov 128   ;;  %s2508_s24 = smov 8  }
   0x6   :  { %38 = dma.hbm_to_vmem [thread:$0]  %s31_s17, 2048, %s33_s19, [#allocation6], %s2507_s23, %s2507_s23, %s2508_s24  }
   0x7   :  { %s2509_s25 = smov [#allocation2]   ;;  %s43_s1 = sshll.u32 %s4318_s2, 4  ;;  %s44_s1 = int_to_ptr.hbm [resolvable:$true] %s43_s1 }
   0x8   :  { %s19_s26 = sshll.u32 %s2509_s25, 4  ;;  %s56_s30 = sshll.u32 %s4319_s3, 4  ;;  %s20_s26 = int_to_ptr.vmem [resolvable:$true] %s19_s26  ;;  %s57_s30 = int_to_ptr.hbm [resolvable:$true] %s56_s30 }
   0x9   :  { %25 = dma.hbm_to_vmem [thread:$0]  %s18_s22, 2048, %s20_s26, [#allocation3], %s2507_s23, %s2507_s23, %s2508_s24  }
   0xa   :  { %s2510_s5 = smov [#allocation7]   ;;  %s2511_s7 = smov [#allocation8]  }
   0xb   :  { %s45_s6 = sshll.u32 %s2510_s5, 4  ;;  %s58_s2 = sshll.u32 %s2511_s7, 4  ;;  %s46_s6 = int_to_ptr.vmem [resolvable:$true] %s45_s6  ;;  %s59_s2 = int_to_ptr.vmem [resolvable:$true] %s58_s2 }
   0xc   :  { %51 = dma.hbm_to_vmem [thread:$0]  %s44_s1, 2048, %s46_s6, [#allocation6], %s2507_s23, %s2507_s23, %s2508_s24  }
   0xd   :  { %s2512_s8 = smov 1152   ;;  %s2513_s9 = smov 72  }
   0xe   :  { %64 = dma.hbm_to_vmem [thread:$0]  %s57_s30, 18432, %s59_s2, [#allocation9], %s2512_s8, %s2512_s8, %s2513_s9  }
   0xf   :  { %2498 = dma.done.wait [#allocation3], 2048  }
  0x10   :  { %2499 = vsyncadd [#allocation3], 4294965248 }
  0x11   :  { %2500 = dma.done.wait [#allocation6], 4096  }
  0x12   :  { %2501 = vsyncadd [#allocation6], 4294963200 }
  0x13   :  { %2502 = dma.done.wait [#allocation9], 18432  }
  0x14   :  { %2503 = vsyncadd [#allocation9], 4294948864  ;;  %v189_v0 = vld [vmem:[#allocation8 + $0x438] sm:$0xff]  ;;  %v185_v1 = vld [vmem:[#allocation8 + $0x3f0] sm:$0xff]  ;;  %s2514_s3 = smov [#allocation10]   ;;  %s1968_s13 = sshll.u32 %s4320_s4, 4  ;;  %s1969_s13 = int_to_ptr.hbm [resolvable:$true] %s1968_s13 }
  0x15   :  { %193 = vmatpush.msra.mxu0 %v189_v0  ;;  %2031 = vmatpush.msra.mxu1 %v189_v0  ;;  %v181_v2 = vld [vmem:[#allocation8 + $0x3a8] sm:$0xff]  ;;  %v177_v3 = vld [vmem:[#allocation8 + $0x360] sm:$0xff]  ;;  %v173_v4 = vld [vmem:[#allocation8 + $0x318] sm:$0xff]  ;;  %s1966_s10 = sshll.u32 %s2514_s3, 4  ;;  %s1967_s10 = int_to_ptr.vmem [resolvable:$true] %s1966_s10 }
  0x16   :  { %2032 = vmatpush.msra.mxu2 %v189_v0  ;;  %2033 = vmatpush.msra.mxu3 %v189_v0  ;;  %v169_v5 = vld [vmem:[#allocation8 + $0x2d0] sm:$0xff]  ;;  %v165_v6 = vld [vmem:[#allocation8 + $0x288] sm:$0xff]  ;;  %v161_v7 = vld [vmem:[#allocation8 + $0x240] sm:$0xff] }
  0x17   :  { %194 = vmatpush.msra.mxu0 %v185_v1  ;;  %2034 = vmatpush.msra.mxu1 %v185_v1  ;;  %v157_v8 = vld [vmem:[#allocation8 + $0x1f8] sm:$0xff]  ;;  %v153_v9 = vld [vmem:[#allocation8 + $0x1b0] sm:$0xff]  ;;  %v149_v10 = vld [vmem:[#allocation8 + $0x168] sm:$0xff] }
  0x18   :  { %2035 = vmatpush.msra.mxu2 %v185_v1  ;;  %2036 = vmatpush.msra.mxu3 %v185_v1  ;;  %v145_v11 = vld [vmem:[#allocation8 + $0x120] sm:$0xff]  ;;  %v141_v12 = vld [vmem:[#allocation8 + $0xd8] sm:$0xff]  ;;  %v137_v13 = vld [vmem:[#allocation8 + $0x90] sm:$0xff] }
  0x19   :  { %195 = vmatpush.msra.mxu0 %v181_v2  ;;  %2037 = vmatpush.msra.mxu1 %v181_v2  ;;  %v133_v14 = vld [vmem:[#allocation8 + $0x48] sm:$0xff]  ;;  %v129_v15 = vld [vmem:[#allocation8] sm:$0xff]  ;;  %v192_v20 = vld [vmem:[#allocation8 + $0x450] sm:$0xff] }
  0x1a   :  { %2038 = vmatpush.msra.mxu2 %v181_v2  ;;  %2039 = vmatpush.msra.mxu3 %v181_v2  ;;  %v2561_v16 = vld [vmem:[#allocation2] sm:$0xff]  ;;  %v191_v22 = vld [vmem:[#allocation8 + $0x448] sm:$0xff]  ;;  %v498_v23 = vld [vmem:[#allocation8 + $0x458] sm:$0xff] }
  0x1b   :  { %196 = vmatpush.msra.mxu0 %v177_v3  ;;  %2040 = vmatpush.msra.mxu1 %v177_v3  ;;  %v2563_v17 = vld [vmem:[#allocation2 + $0x20] sm:$0xff]  ;;  %v188_v24 = vld [vmem:[#allocation8 + $0x408] sm:$0xff]  ;;  %v186_v25 = vld [vmem:[#allocation8 + $0x3f8] sm:$0xff] }
  0x1c   :  { %2041 = vmatpush.msra.mxu2 %v177_v3  ;;  %2042 = vmatpush.msra.mxu3 %v177_v3  ;;  %v2565_v18 = vld [vmem:[#allocation2 + $0x40] sm:$0xff]  ;;  %v495_v27 = vld [vmem:[#allocation8 + $0x410] sm:$0xff]  ;;  %v183_v30 = vld [vmem:[#allocation8 + $0x3b8] sm:$0xff] }
  0x1d   :  { %197 = vmatpush.msra.mxu0 %v173_v4  ;;  %2043 = vmatpush.msra.mxu1 %v173_v4  ;;  %v2567_v19 = vld [vmem:[#allocation2 + $0x60] sm:$0xff]  ;;  %v182_v29 = vld [vmem:[#allocation8 + $0x3b0] sm:$0xff]  ;;  %v492_v31 = vld [vmem:[#allocation8 + $0x3c8] sm:$0xff] }
  0x1e   :  { %2044 = vmatpush.msra.mxu2 %v173_v4  ;;  %2045 = vmatpush.msra.mxu3 %v173_v4  ;;  %v190_v21 = vld [vmem:[#allocation8 + $0x440] sm:$0xff]  ;;  %v180_v32 = vld [vmem:[#allocation8 + $0x378] sm:$0xff]  ;;  %v178_v33 = vld [vmem:[#allocation8 + $0x368] sm:$0xff] }
  0x1f   :  { %198 = vmatpush.msra.mxu0 %v169_v5  ;;  %2046 = vmatpush.msra.mxu1 %v169_v5  ;;  %v187_v26 = vld [vmem:[#allocation8 + $0x400] sm:$0xff]  ;;  %v179_v34 = vld [vmem:[#allocation8 + $0x370] sm:$0xff]  ;;  %v2573_v36 = vld [vmem:[#allocation2 + $0x8] sm:$0xff] }
  0x20   :  { %2047 = vmatpush.msra.mxu2 %v169_v5  ;;  %2048 = vmatpush.msra.mxu3 %v169_v5  ;;  %v184_v28 = vld [vmem:[#allocation8 + $0x3c0] sm:$0xff]  ;;  %v2575_v37 = vld [vmem:[#allocation2 + $0x28] sm:$0xff]  ;;  %v176_v40 = vld [vmem:[#allocation8 + $0x330] sm:$0xff] }
  0x21   :  { %199 = vmatpush.msra.mxu0 %v165_v6  ;;  %2049 = vmatpush.msra.mxu1 %v165_v6  ;;  %v489_v35 = vld [vmem:[#allocation8 + $0x380] sm:$0xff]  ;;  %v2577_v38 = vld [vmem:[#allocation2 + $0x48] sm:$0xff]  ;;  %v486_v43 = vld [vmem:[#allocation8 + $0x338] sm:$0xff] }
  0x22   :  { %2050 = vmatpush.msra.mxu2 %v165_v6  ;;  %2051 = vmatpush.msra.mxu3 %v165_v6  ;;  %v2579_v39 = vld [vmem:[#allocation2 + $0x68] sm:$0xff]  ;;  %v174_v41 = vld [vmem:[#allocation8 + $0x320] sm:$0xff]  ;;  %v170_v45 = vld [vmem:[#allocation8 + $0x2d8] sm:$0xff] }
  0x23   :  { %200 = vmatpush.msra.mxu0 %v161_v7  ;;  %2052 = vmatpush.msra.mxu1 %v161_v7  ;;  %v175_v42 = vld [vmem:[#allocation8 + $0x328] sm:$0xff]  ;;  %v171_v46 = vld [vmem:[#allocation8 + $0x2e0] sm:$0xff]  ;;  %v483_v47 = vld [vmem:[#allocation8 + $0x2f0] sm:$0xff] }
  0x24   :  { %2053 = vmatpush.msra.mxu2 %v161_v7  ;;  %2054 = vmatpush.msra.mxu3 %v161_v7  ;;  %v172_v44 = vld [vmem:[#allocation8 + $0x2e8] sm:$0xff]  ;;  %v168_v48 = vld [vmem:[#allocation8 + $0x2a0] sm:$0xff]  ;;  %v166_v49 = vld [vmem:[#allocation8 + $0x290] sm:$0xff] }
  0x25   :  { %201 = vmatpush.msra.mxu0 %v157_v8  ;;  %2055 = vmatpush.msra.mxu1 %v157_v8  ;;  %v167_v50 = vld [vmem:[#allocation8 + $0x298] sm:$0xff]  ;;  %v480_v51 = vld [vmem:[#allocation8 + $0x2a8] sm:$0xff]  ;;  %v163_v54 = vld [vmem:[#allocation8 + $0x250] sm:$0xff] }
  0x26   :  { %2056 = vmatpush.msra.mxu2 %v157_v8  ;;  %2057 = vmatpush.msra.mxu3 %v157_v8  ;;  %v164_v52 = vld [vmem:[#allocation8 + $0x258] sm:$0xff]  ;;  %v162_v53 = vld [vmem:[#allocation8 + $0x248] sm:$0xff]  ;;  %v477_v55 = vld [vmem:[#allocation8 + $0x260] sm:$0xff] }
  0x27   :  { %202 = vmatpush.msra.mxu0 %v153_v9  ;;  %2058 = vmatpush.msra.mxu1 %v153_v9  ;;  %v2585_v56 = vld [vmem:[#allocation2 + $0x10] sm:$0xff]  ;;  %v158_v61 = vld [vmem:[#allocation8 + $0x200] sm:$0xff]  ;;  %v159_v62 = vld [vmem:[#allocation8 + $0x208] sm:$0xff] }
  0x28   :  { %2059 = vmatpush.msra.mxu2 %v153_v9  ;;  %2060 = vmatpush.msra.mxu3 %v153_v9  ;;  %v2587_v57 = vld [vmem:[#allocation2 + $0x30] sm:$0xff]  ;;  %v474_v63 = vld [vmem:[#allocation8 + $0x218] sm:$0xff]  ;;  %v156_v0 = vld [vmem:[#allocation8 + $0x1c8] sm:$0xff] }
  0x29   :  { %203 = vmatpush.msra.mxu0 %v149_v10  ;;  %2061 = vmatpush.msra.mxu1 %v149_v10  ;;  %v2589_v58 = vld [vmem:[#allocation2 + $0x50] sm:$0xff]  ;;  %v154_v1 = vld [vmem:[#allocation8 + $0x1b8] sm:$0xff]  ;;  %v155_v2 = vld [vmem:[#allocation8 + $0x1c0] sm:$0xff] }
  0x2a   :  { %2062 = vmatpush.msra.mxu2 %v149_v10  ;;  %2063 = vmatpush.msra.mxu3 %v149_v10  ;;  %v2591_v59 = vld [vmem:[#allocation2 + $0x70] sm:$0xff]  ;;  %v152_v4 = vld [vmem:[#allocation8 + $0x180] sm:$0xff]  ;;  %v151_v6 = vld [vmem:[#allocation8 + $0x178] sm:$0xff] }
  0x2b   :  { %204 = vmatpush.msra.mxu0 %v145_v11  ;;  %2064 = vmatpush.msra.mxu1 %v145_v11  ;;  %v160_v60 = vld [vmem:[#allocation8 + $0x210] sm:$0xff]  ;;  %v468_v7 = vld [vmem:[#allocation8 + $0x188] sm:$0xff]  ;;  %v148_v8 = vld [vmem:[#allocation8 + $0x138] sm:$0xff] }
  0x2c   :  { %2065 = vmatpush.msra.mxu2 %v145_v11  ;;  %2066 = vmatpush.msra.mxu3 %v145_v11  ;;  %v471_v3 = vld [vmem:[#allocation8 + $0x1d0] sm:$0xff]  ;;  %v146_v9 = vld [vmem:[#allocation8 + $0x128] sm:$0xff]  ;;  %v465_v11 = vld [vmem:[#allocation8 + $0x140] sm:$0xff] }
  0x2d   :  { %205 = vmatpush.msra.mxu0 %v141_v12  ;;  %2067 = vmatpush.msra.mxu1 %v141_v12  ;;  %v150_v5 = vld [vmem:[#allocation8 + $0x170] sm:$0xff] }
  0x2e   :  { %2068 = vmatpush.msra.mxu2 %v141_v12  ;;  %2069 = vmatpush.msra.mxu3 %v141_v12  ;;  %v147_v10 = vld [vmem:[#allocation8 + $0x130] sm:$0xff]  ;;  %v2597_v12 = vld [vmem:[#allocation2 + $0x18] sm:$0xff] }
  0x2f   :  { %206 = vmatpush.msra.mxu0 %v137_v13  ;;  %2070 = vmatpush.msra.mxu1 %v137_v13 }
  0x30   :  { %2071 = vmatpush.msra.mxu2 %v137_v13  ;;  %2072 = vmatpush.msra.mxu3 %v137_v13  ;;  %v2599_v13 = vld [vmem:[#allocation2 + $0x38] sm:$0xff] }
  0x31   :  { %207 = vmatpush.msra.mxu0 %v133_v14  ;;  %2073 = vmatpush.msra.mxu1 %v133_v14 }
  0x32   :  { %2074 = vmatpush.msra.mxu2 %v133_v14  ;;  %2075 = vmatpush.msra.mxu3 %v133_v14  ;;  %v2601_v14 = vld [vmem:[#allocation2 + $0x58] sm:$0xff] }
  0x33   :  { %208 = vmatpush.msra.mxu0 %v129_v15  ;;  %2076 = vmatpush.msra.mxu1 %v129_v15 }
  0x34   :  { %2077 = vmatpush.msra.mxu2 %v129_v15  ;;  %2078 = vmatpush.msra.mxu3 %v129_v15  ;;  %v2603_v15 = vld [vmem:[#allocation2 + $0x78] sm:$0xff] }
  0x35   :  { %209 = vmatmul.f32.vlgmr.msra.gmra.mxu0 %v2561_v16  ;;  %221 = vmatmul.f32.vlgmr.msra.gmra.mxu1 %v2563_v17 }
  0x36   :  { %233 = vmatmul.f32.vlgmr.msra.gmra.mxu2 %v2565_v18  ;;  %245 = vmatmul.f32.vlgmr.msra.gmra.mxu3 %v2567_v19 }
  0x37   :  { %388 = vmatpush.msrb.mxu3 %v192_v20  ;;  %258 = vmatpush.msrb.mxu1 %v190_v21  ;;  %v144_v20 = vld [vmem:[#allocation8 + $0xf0] sm:$0xff]  ;;  %v142_v21 = vld [vmem:[#allocation8 + $0xe0] sm:$0xff] }
  0x38   :  { %323 = vmatpush.msrb.mxu2 %v191_v22  ;;  %501 = vmatpush.msrb.mxu0 %v498_v23  ;;  %v143_v22 = vld [vmem:[#allocation8 + $0xe8] sm:$0xff]  ;;  %v462_v23 = vld [vmem:[#allocation8 + $0xf8] sm:$0xff] }
  0x39   :  { %389 = vmatpush.msrb.mxu3 %v188_v24  ;;  %259 = vmatpush.msrb.mxu1 %v186_v25  ;;  %v140_v24 = vld [vmem:[#allocation8 + $0xa8] sm:$0xff]  ;;  %v138_v25 = vld [vmem:[#allocation8 + $0x98] sm:$0xff] }
  0x3a   :  { %324 = vmatpush.msrb.mxu2 %v187_v26  ;;  %502 = vmatpush.msrb.mxu0 %v495_v27  ;;  %v139_v26 = vld [vmem:[#allocation8 + $0xa0] sm:$0xff]  ;;  %v459_v27 = vld [vmem:[#allocation8 + $0xb0] sm:$0xff] }
  0x3b   :  { %390 = vmatpush.msrb.mxu3 %v184_v28  ;;  %260 = vmatpush.msrb.mxu1 %v182_v29  ;;  %v136_v28 = vld [vmem:[#allocation8 + $0x60] sm:$0xff]  ;;  %v134_v29 = vld [vmem:[#allocation8 + $0x50] sm:$0xff] }
  0x3c   :  { %325 = vmatpush.msrb.mxu2 %v183_v30  ;;  %503 = vmatpush.msrb.mxu0 %v492_v31  ;;  %v135_v30 = vld [vmem:[#allocation8 + $0x58] sm:$0xff]  ;;  %v456_v31 = vld [vmem:[#allocation8 + $0x68] sm:$0xff] }
  0x3d   :  { %391 = vmatpush.msrb.mxu3 %v180_v32  ;;  %261 = vmatpush.msrb.mxu1 %v178_v33  ;;  %v132_v32 = vld [vmem:[#allocation8 + $0x18] sm:$0xff]  ;;  %v130_v33 = vld [vmem:[#allocation8 + $0x8] sm:$0xff] }
  0x3e   :  { %326 = vmatpush.msrb.mxu2 %v179_v34  ;;  %504 = vmatpush.msrb.mxu0 %v489_v35  ;;  %v131_v34 = vld [vmem:[#allocation8 + $0x10] sm:$0xff]  ;;  %v453_v35 = vld [vmem:[#allocation8 + $0x20] sm:$0xff] }
  0x3f   :  { %212 = vmatmul.f32.gmra.mxu0 %v2573_v36  ;;  %224 = vmatmul.f32.gmra.mxu1 %v2575_v37 }
  0x40   :  { %236 = vmatmul.f32.gmra.mxu2 %v2577_v38  ;;  %248 = vmatmul.f32.gmra.mxu3 %v2579_v39 }
  0x41   :  { %392 = vmatpush.msrb.mxu3 %v176_v40  ;;  %262 = vmatpush.msrb.mxu1 %v174_v41  ;;  %v2609_v40 = vld [vmem:[#allocation5] sm:$0xff]  ;;  %v726_v41 = vld [vmem:[#allocation8 + $0x470] sm:$0xff] }
  0x42   :  { %327 = vmatpush.msrb.mxu2 %v175_v42  ;;  %505 = vmatpush.msrb.mxu0 %v486_v43  ;;  %v499_v42 = vld [vmem:[#allocation8 + $0x460] sm:$0xff]  ;;  %v500_v43 = vld [vmem:[#allocation8 + $0x468] sm:$0xff] }
  0x43   :  { %393 = vmatpush.msrb.mxu3 %v172_v44  ;;  %263 = vmatpush.msrb.mxu1 %v170_v45  ;;  %v727_v44 = vld [vmem:[#allocation8 + $0x478] sm:$0xff]  ;;  %v724_v45 = vld [vmem:[#allocation8 + $0x428] sm:$0xff] }
  0x44   :  { %328 = vmatpush.msrb.mxu2 %v171_v46  ;;  %506 = vmatpush.msrb.mxu0 %v483_v47  ;;  %v496_v46 = vld [vmem:[#allocation8 + $0x418] sm:$0xff]  ;;  %v497_v47 = vld [vmem:[#allocation8 + $0x420] sm:$0xff] }
  0x45   :  { %394 = vmatpush.msrb.mxu3 %v168_v48  ;;  %264 = vmatpush.msrb.mxu1 %v166_v49  ;;  %v725_v48 = vld [vmem:[#allocation8 + $0x430] sm:$0xff]  ;;  %v722_v49 = vld [vmem:[#allocation8 + $0x3e0] sm:$0xff] }
  0x46   :  { %329 = vmatpush.msrb.mxu2 %v167_v50  ;;  %507 = vmatpush.msrb.mxu0 %v480_v51  ;;  %v493_v50 = vld [vmem:[#allocation8 + $0x3d0] sm:$0xff]  ;;  %v494_v51 = vld [vmem:[#allocation8 + $0x3d8] sm:$0xff] }
  0x47   :  { %395 = vmatpush.msrb.mxu3 %v164_v52  ;;  %265 = vmatpush.msrb.mxu1 %v162_v53  ;;  %v2615_v52 = vld [vmem:[#allocation5 + $0x8] sm:$0xff] }
  0x48   :  { %330 = vmatpush.msrb.mxu2 %v163_v54  ;;  %508 = vmatpush.msrb.mxu0 %v477_v55  ;;  %v490_v53 = vld [vmem:[#allocation8 + $0x388] sm:$0xff]  ;;  %v718_v54 = vld [vmem:[#allocation8 + $0x350] sm:$0xff]  ;;  %v487_v55 = vld [vmem:[#allocation8 + $0x340] sm:$0xff] }
  0x49   :  { %215 = vmatmul.f32.gmra.mxu0 %v2585_v56  ;;  %227 = vmatmul.f32.gmra.mxu1 %v2587_v57 }
  0x4a   :  { %239 = vmatmul.f32.gmra.mxu2 %v2589_v58  ;;  %251 = vmatmul.f32.gmra.mxu3 %v2591_v59 }
  0x4b   :  { %396 = vmatpush.msrb.mxu3 %v160_v60  ;;  %266 = vmatpush.msrb.mxu1 %v158_v61  ;;  %v491_v60 = vld [vmem:[#allocation8 + $0x390] sm:$0xff]  ;;  %v723_v61 = vld [vmem:[#allocation8 + $0x3e8] sm:$0xff] }
  0x4c   :  { %331 = vmatpush.msrb.mxu2 %v159_v62  ;;  %509 = vmatpush.msrb.mxu0 %v474_v63  ;;  %v716_v62 = vld [vmem:[#allocation8 + $0x308] sm:$0xff]  ;;  %v484_v63 = vld [vmem:[#allocation8 + $0x2f8] sm:$0xff] }
  0x4d   :  { %397 = vmatpush.msrb.mxu3 %v156_v0  ;;  %267 = vmatpush.msrb.mxu1 %v154_v1  ;;  %v2621_v0 = vld [vmem:[#allocation5 + $0x10] sm:$0xff] }
  0x4e   :  { %332 = vmatpush.msrb.mxu2 %v155_v2  ;;  %510 = vmatpush.msrb.mxu0 %v471_v3  ;;  %v481_v1 = vld [vmem:[#allocation8 + $0x2b0] sm:$0xff]  ;;  %v488_v2 = vld [vmem:[#allocation8 + $0x348] sm:$0xff]  ;;  %v721_v3 = vld [vmem:[#allocation8 + $0x3a0] sm:$0xff] }
  0x4f   :  { %398 = vmatpush.msrb.mxu3 %v152_v4  ;;  %268 = vmatpush.msrb.mxu1 %v150_v5  ;;  %v2627_v4 = vld [vmem:[#allocation5 + $0x18] sm:$0xff]  ;;  %v478_v5 = vld [vmem:[#allocation8 + $0x268] sm:$0xff] }
  0x50   :  { %333 = vmatpush.msrb.mxu2 %v151_v6  ;;  %511 = vmatpush.msrb.mxu0 %v468_v7  ;;  %v485_v6 = vld [vmem:[#allocation8 + $0x300] sm:$0xff]  ;;  %v719_v7 = vld [vmem:[#allocation8 + $0x358] sm:$0xff] }
  0x51   :  { %399 = vmatpush.msrb.mxu3 %v148_v8  ;;  %269 = vmatpush.msrb.mxu1 %v146_v9  ;;  %v2633_v8 = vld [vmem:[#allocation5 + $0x20] sm:$0xff]  ;;  %v710_v9 = vld [vmem:[#allocation8 + $0x230] sm:$0xff] }
  0x52   :  { %334 = vmatpush.msrb.mxu2 %v147_v10  ;;  %512 = vmatpush.msrb.mxu0 %v465_v11  ;;  %v475_v10 = vld [vmem:[#allocation8 + $0x220] sm:$0xff]  ;;  %v482_v11 = vld [vmem:[#allocation8 + $0x2b8] sm:$0xff] }
  0x53   :  { %218 = vmatmul.f32.gmra.mxu0 %v2597_v12  ;;  %230 = vmatmul.f32.gmra.mxu1 %v2599_v13 }
  0x54   :  { %242 = vmatmul.f32.gmra.mxu2 %v2601_v14  ;;  %254 = vmatmul.f32.gmra.mxu3 %v2603_v15 }
  0x55   :  { %400 = vmatpush.msrb.mxu3 %v144_v20  ;;  %270 = vmatpush.msrb.mxu1 %v142_v21  ;;  %v2639_v20 = vld [vmem:[#allocation5 + $0x28] sm:$0xff]  ;;  %v472_v21 = vld [vmem:[#allocation8 + $0x1d8] sm:$0xff] }
  0x56   :  { %335 = vmatpush.msrb.mxu2 %v143_v22  ;;  %513 = vmatpush.msrb.mxu0 %v462_v23  ;;  %v479_v22 = vld [vmem:[#allocation8 + $0x270] sm:$0xff]  ;;  %v715_v23 = vld [vmem:[#allocation8 + $0x2c8] sm:$0xff] }
  0x57   :  { %401 = vmatpush.msrb.mxu3 %v140_v24  ;;  %271 = vmatpush.msrb.mxu1 %v138_v25  ;;  %v2645_v24 = vld [vmem:[#allocation5 + $0x30] sm:$0xff] }
  0x58   :  { %336 = vmatpush.msrb.mxu2 %v139_v26  ;;  %514 = vmatpush.msrb.mxu0 %v459_v27  ;;  %v469_v25 = vld [vmem:[#allocation8 + $0x190] sm:$0xff]  ;;  %v476_v26 = vld [vmem:[#allocation8 + $0x228] sm:$0xff]  ;;  %v713_v27 = vld [vmem:[#allocation8 + $0x280] sm:$0xff] }
  0x59   :  { %402 = vmatpush.msrb.mxu3 %v136_v28  ;;  %272 = vmatpush.msrb.mxu1 %v134_v29  ;;  %v2651_v28 = vld [vmem:[#allocation5 + $0x38] sm:$0xff]  ;;  %v466_v29 = vld [vmem:[#allocation8 + $0x148] sm:$0xff] }
  0x5a   :  { %337 = vmatpush.msrb.mxu2 %v135_v30  ;;  %515 = vmatpush.msrb.mxu0 %v456_v31  ;;  %v2657_v30 = vld [vmem:[#allocation5 + $0x40] sm:$0xff]  ;;  %v2663_v31 = vld [vmem:[#allocation5 + $0x48] sm:$0xff] }
  0x5b   :  { %403 = vmatpush.msrb.mxu3 %v132_v32  ;;  %273 = vmatpush.msrb.mxu1 %v130_v33  ;;  %v711_v32 = vld [vmem:[#allocation8 + $0x238] sm:$0xff]  ;;  %v702_v33 = vld [vmem:[#allocation8 + $0x110] sm:$0xff] }
  0x5c   :  { %338 = vmatpush.msrb.mxu2 %v131_v34  ;;  %516 = vmatpush.msrb.mxu0 %v453_v35  ;;  %v2669_v34 = vld [vmem:[#allocation5 + $0x50] sm:$0xff]  ;;  %v470_v35 = vld [vmem:[#allocation8 + $0x198] sm:$0xff] }
  0x5d   :  { %274 = vmatmul.f32.vlgmr.msrb.gmra.mxu1 %v2561_v16  ;;  %339 = vmatmul.f32.vlgmr.msrb.gmra.mxu2 %v2561_v16 }
  0x5e   :  { %404 = vmatmul.f32.vlgmr.msrb.gmra.mxu3 %v2561_v16  ;;  %517 = vmatmul.f32.vlgmr.msrb.gmra.mxu0 %v2609_v40  ;;  %v720_v16 = vld [vmem:[#allocation8 + $0x398] sm:$0xff] }
  0x5f   :  { %728 = vmatpush.msra.mxu3 %v726_v41  ;;  %566 = vmatpush.msra.mxu1 %v499_v42  ;;  %v2677_v41 = vld [vmem:[#allocation5 + $0x58] sm:$0xff] }
  0x60   :  { %631 = vmatpush.msra.mxu2 %v500_v43  ;;  %793 = vmatpush.msra.mxu0 %v727_v44  ;;  %v709_v43 = vld [vmem:[#allocation8 + $0x1f0] sm:$0xff]  ;;  %v700_v44 = vld [vmem:[#allocation8 + $0xc8] sm:$0xff] }
  0x61   :  { %729 = vmatpush.msra.mxu3 %v724_v45  ;;  %567 = vmatpush.msra.mxu1 %v496_v46  ;;  %v467_v45 = vld [vmem:[#allocation8 + $0x150] sm:$0xff]  ;;  %v460_v46 = vld [vmem:[#allocation8 + $0xb8] sm:$0xff] }
  0x62   :  { %632 = vmatpush.msra.mxu2 %v497_v47  ;;  %794 = vmatpush.msra.mxu0 %v725_v48 }
  0x63   :  { %730 = vmatpush.msra.mxu3 %v722_v49  ;;  %568 = vmatpush.msra.mxu1 %v493_v50  ;;  %v461_v49 = vld [vmem:[#allocation8 + $0xc0] sm:$0xff] }
  0x64   :  { %633 = vmatpush.msra.mxu2 %v494_v51  ;;  %795 = vmatpush.msra.mxu0 %v723_v61  ;;  %v698_v50 = vld [vmem:[#allocation8 + $0x80] sm:$0xff]  ;;  %v457_v51 = vld [vmem:[#allocation8 + $0x70] sm:$0xff]  ;;  %v454_v61 = vld [vmem:[#allocation8 + $0x28] sm:$0xff] }
  0x65   :  { %277 = vmatmul.f32.gmra.mxu1 %v2573_v36  ;;  %342 = vmatmul.f32.gmra.mxu2 %v2573_v36 }
  0x66   :  { %407 = vmatmul.f32.gmra.mxu3 %v2573_v36  ;;  %520 = vmatmul.f32.gmra.mxu0 %v2615_v52  ;;  %v714_v36 = vld [vmem:[#allocation8 + $0x2c0] sm:$0xff] }
  0x67   :  { %731 = vmatpush.msra.mxu3 %v720_v16  ;;  %569 = vmatpush.msra.mxu1 %v490_v53  ;;  %v2689_v16 = vld [vmem:[#allocation5 + $0x60] sm:$0xff] }
  0x68   :  { %634 = vmatpush.msra.mxu2 %v491_v60  ;;  %796 = vmatpush.msra.mxu0 %v721_v3  ;;  %v707_v60 = vld [vmem:[#allocation8 + $0x1a8] sm:$0xff]  ;;  %v705_v3 = vld [vmem:[#allocation8 + $0x160] sm:$0xff] }
  0x69   :  { %732 = vmatpush.msra.mxu3 %v718_v54  ;;  %570 = vmatpush.msra.mxu1 %v487_v55  ;;  %v696_v54 = vld [vmem:[#allocation8 + $0x38] sm:$0xff] }
  0x6a   :  { %635 = vmatpush.msra.mxu2 %v488_v2  ;;  %797 = vmatpush.msra.mxu0 %v719_v7  ;;  %v458_v55 = vld [vmem:[#allocation8 + $0x78] sm:$0xff] }
  0x6b   :  { %733 = vmatpush.msra.mxu3 %v716_v62  ;;  %571 = vmatpush.msra.mxu1 %v484_v63  ;;  %v455_v62 = vld [vmem:[#allocation8 + $0x30] sm:$0xff]  ;;  %v2699_v63 = vld [vmem:[#allocation5 + $0x68] sm:$0xff] }
  0x6c   :  { %636 = vmatpush.msra.mxu2 %v485_v6  ;;  %4324 = vst [vmem:[#allocation15_spill] sm:$0xff] %v2699_v63 }
  0x6d   :  { %280 = vmatmul.f32.gmra.mxu1 %v2585_v56  ;;  %345 = vmatmul.f32.gmra.mxu2 %v2585_v56 }
  0x6e   :  { %410 = vmatmul.f32.gmra.mxu3 %v2585_v56  ;;  %523 = vmatmul.f32.gmra.mxu0 %v2621_v0  ;;  %v712_v56 = vld [vmem:[#allocation8 + $0x278] sm:$0xff] }
  0x6f   :  { %734 = vmatpush.msra.mxu3 %v714_v36  ;;  %572 = vmatpush.msra.mxu1 %v481_v1 }
  0x70   :  { %637 = vmatpush.msra.mxu2 %v482_v11  ;;  %v701_v11 = vld [vmem:[#allocation8 + $0xd0] sm:$0xff] }
  0x71   :  { %735 = vmatpush.msra.mxu3 %v712_v56  ;;  %573 = vmatpush.msra.mxu1 %v478_v5  ;;  %v2713_v56 = vld [vmem:[#allocation5 + $0x70] sm:$0xff] }
  0x72   :  { %638 = vmatpush.msra.mxu2 %v479_v22  ;;  %4325 = vst [vmem:[#allocation16_spill] sm:$0xff] %v2713_v56  ;;  %v697_v22 = vld [vmem:[#allocation8 + $0x40] sm:$0xff] }
  0x73   :  { %736 = vmatpush.msra.mxu3 %v710_v9  ;;  %574 = vmatpush.msra.mxu1 %v475_v10  ;;  %v112_v9 = vld [vmem:[#allocation5 + $0x78] sm:$0xff] }
  0x74   :  { %639 = vmatpush.msra.mxu2 %v476_v26  ;;  %v703_v10 = vld [vmem:[#allocation8 + $0x118] sm:$0xff] }
  0x75   :  { %283 = vmatmul.f32.gmra.mxu1 %v2597_v12  ;;  %348 = vmatmul.f32.gmra.mxu2 %v2597_v12 }
  0x76   :  { %413 = vmatmul.f32.gmra.mxu3 %v2597_v12  ;;  %526 = vmatmul.f32.gmra.mxu0 %v2627_v4  ;;  %v717_v12 = vld [vmem:[#allocation8 + $0x310] sm:$0xff] }
  0x77   :  { %798 = vmatpush.msra.mxu0 %v717_v12  ;;  %575 = vmatpush.msra.mxu1 %v472_v21 }
  0x79   :  { %799 = vmatpush.msra.mxu0 %v715_v23  ;;  %576 = vmatpush.msra.mxu1 %v469_v25 }
  0x7b   :  { %800 = vmatpush.msra.mxu0 %v713_v27  ;;  %577 = vmatpush.msra.mxu1 %v466_v29 }
  0x7d   :  { %286 = vmatmul.f32.gmra.mxu1 %v2563_v17  ;;  %351 = vmatmul.f32.gmra.mxu2 %v2563_v17 }
  0x7e   :  { %416 = vmatmul.f32.gmra.mxu3 %v2563_v17  ;;  %529 = vmatmul.f32.gmra.mxu0 %v2633_v8  ;;  %v708_v17 = vld [vmem:[#allocation8 + $0x1e8] sm:$0xff] }
  0x7f   :  { %737 = vmatpush.msra.mxu3 %v708_v17  ;;  %801 = vmatpush.msra.mxu0 %v711_v32  ;;  %v699_v17 = vld [vmem:[#allocation8 + $0x88] sm:$0xff] }
  0x81   :  { %802 = vmatpush.msra.mxu0 %v709_v43 }
  0x83   :  { %803 = vmatpush.msra.mxu0 %v707_v60  ;;  %v117_v60 = vld [vmem:[#allocation7 + $0x20] sm:$0xff] }
  0x85   :  { %289 = vmatmul.f32.gmra.mxu1 %v2575_v37  ;;  %354 = vmatmul.f32.gmra.mxu2 %v2575_v37 }
  0x86   :  { %419 = vmatmul.f32.gmra.mxu3 %v2575_v37  ;;  %532 = vmatmul.f32.gmra.mxu0 %v2639_v20  ;;  %v706_v37 = vld [vmem:[#allocation8 + $0x1a0] sm:$0xff] }
  0x87   :  { %738 = vmatpush.msra.mxu3 %v706_v37  ;;  %804 = vmatpush.msra.mxu0 %v705_v3  ;;  %v113_v37 = vld [vmem:[#allocation7] sm:$0xff] }
  0x89   :  { %805 = vmatpush.msra.mxu0 %v703_v10 }
  0x8b   :  { %806 = vmatpush.msra.mxu0 %v701_v11 }
  0x8d   :  { %292 = vmatmul.f32.gmra.mxu1 %v2587_v57  ;;  %357 = vmatmul.f32.gmra.mxu2 %v2587_v57 }
  0x8e   :  { %422 = vmatmul.f32.gmra.mxu3 %v2587_v57  ;;  %535 = vmatmul.f32.gmra.mxu0 %v2645_v24  ;;  %v704_v57 = vld [vmem:[#allocation8 + $0x158] sm:$0xff] }
  0x8f   :  { %739 = vmatpush.msra.mxu3 %v704_v57  ;;  %807 = vmatpush.msra.mxu0 %v699_v17  ;;  %v114_v57 = vld [vmem:[#allocation7 + $0x8] sm:$0xff] }
  0x90   :  { %v118_v17 = vld [vmem:[#allocation7 + $0x28] sm:$0xff] }
  0x91   :  { %740 = vmatpush.msra.mxu3 %v702_v33  ;;  %808 = vmatpush.msra.mxu0 %v697_v22  ;;  %v115_v33 = vld [vmem:[#allocation7 + $0x10] sm:$0xff] }
  0x93   :  { %741 = vmatpush.msra.mxu3 %v700_v44 }
  0x95   :  { %295 = vmatmul.f32.gmra.mxu1 %v2599_v13  ;;  %360 = vmatmul.f32.gmra.mxu2 %v2599_v13 }
  0x96   :  { %425 = vmatmul.f32.gmra.mxu3 %v2599_v13  ;;  %538 = vmatmul.f32.gmra.mxu0 %v2651_v28  ;;  %v473_v13 = vld [vmem:[#allocation8 + $0x1e0] sm:$0xff] }
  0x97   :  { %640 = vmatpush.msra.mxu2 %v473_v13  ;;  %742 = vmatpush.msra.mxu3 %v698_v50 }
  0x99   :  { %641 = vmatpush.msra.mxu2 %v470_v35  ;;  %743 = vmatpush.msra.mxu3 %v696_v54 }
  0x9b   :  { %642 = vmatpush.msra.mxu2 %v467_v45 }
  0x9d   :  { %298 = vmatmul.f32.gmra.mxu1 %v2565_v18  ;;  %363 = vmatmul.f32.gmra.mxu2 %v2565_v18 }
  0x9e   :  { %428 = vmatmul.f32.gmra.mxu3 %v2565_v18  ;;  %541 = vmatmul.f32.gmra.mxu0 %v2657_v30  ;;  %v463_v18 = vld [vmem:[#allocation8 + $0x100] sm:$0xff] }
  0x9f   :  { %578 = vmatpush.msra.mxu1 %v463_v18 }
  0xa1   :  { %579 = vmatpush.msra.mxu1 %v460_v46 }
  0xa3   :  { %580 = vmatpush.msra.mxu1 %v457_v51 }
  0xa5   :  { %301 = vmatmul.f32.gmra.mxu1 %v2577_v38  ;;  %366 = vmatmul.f32.gmra.mxu2 %v2577_v38 }
  0xa6   :  { %431 = vmatmul.f32.gmra.mxu3 %v2577_v38  ;;  %544 = vmatmul.f32.gmra.mxu0 %v2663_v31 }
  0xa7   :  { %581 = vmatpush.msra.mxu1 %v454_v61 }
  0xad   :  { %304 = vmatmul.f32.gmra.mxu1 %v2589_v58  ;;  %369 = vmatmul.f32.gmra.mxu2 %v2589_v58 }
  0xae   :  { %434 = vmatmul.f32.gmra.mxu3 %v2589_v58  ;;  %547 = vmatmul.f32.gmra.mxu0 %v2669_v34  ;;  %v464_v58 = vld [vmem:[#allocation8 + $0x108] sm:$0xff] }
  0xaf   :  { %643 = vmatpush.msra.mxu2 %v464_v58  ;;  %v116_v58 = vld [vmem:[#allocation7 + $0x18] sm:$0xff] }
  0xb1   :  { %644 = vmatpush.msra.mxu2 %v461_v49 }
  0xb2   :  { %v2675_v38 = vpop.f32.mrf.mxu1  ;;  %v2679_v42 = vpop.f32.mrf.mxu0 }
  0xb3   :  { %645 = vmatpush.msra.mxu2 %v458_v55  ;;  %v1983_v18 = vmul.f32 -1.442695, %v2679_v42 }
  0xb5   :  { %307 = vmatmul.f32.gmra.mxu1 %v2601_v14  ;;  %372 = vmatmul.f32.gmra.mxu2 %v2601_v14  ;;  %2088 = vpow2.f32 %v1983_v18 }
  0xb6   :  { %437 = vmatmul.f32.gmra.mxu3 %v2601_v14  ;;  %550 = vmatmul.f32.gmra.mxu0 %v2677_v41 }
  0xb7   :  { %646 = vmatpush.msra.mxu2 %v455_v62 }
  0xb9   :  { %v2685_v47 = vpop.f32.mrf.mxu2  ;;  %v2687_v48 = vpop.f32.mrf.mxu3 }
  0xba   :  { %v1995_v42 = vmul.f32 -1.442695, %v2687_v48 }
  0xbc   :  { %v2691_v53 = vpop.f32.mrf.mxu1  ;;  %v2695_v14 = vpop.f32.mrf.mxu0 }
  0xbd   :  { %310 = vmatmul.f32.gmra.mxu1 %v2567_v19  ;;  %375 = vmatmul.f32.gmra.mxu2 %v2567_v19  ;;  %v1984_v46 = vmul.f32 -1.442695, %v2695_v14 }
  0xbe   :  { %440 = vmatmul.f32.gmra.mxu3 %v2567_v19  ;;  %553 = vmatmul.f32.gmra.mxu0 %v2689_v16 }
  0xc3   :  { %v2701_v36 = vpop.f32.mrf.mxu2  ;;  %v2703_v1 = vpop.f32.mrf.mxu3 }
  0xc5   :  { %313 = vmatmul.f32.gmra.mxu1 %v2579_v39  ;;  %378 = vmatmul.f32.gmra.mxu2 %v2579_v39 }
  0xc6   :  { %443 = vmatmul.f32.gmra.mxu3 %v2579_v39  ;;  %556 = vmatmul.f32.gmra.mxu0 %v2699_v63  ;;  %v2709_v19 = vpop.f32.mrf.mxu1  ;;  %v2711_v2 = vpop.f32.mrf.mxu0 }
  0xc7   :  { %v1985_v14 = vmul.f32 -1.442695, %v2711_v2  ;;  %v1989_v3 = vmul.f32 -1.442695, %v2709_v19  ;;  %v1992_v19 = vmul.f32 -1.442695, %v2701_v36 }
  0xcd   :  { %316 = vmatmul.f32.gmra.mxu1 %v2591_v59  ;;  %381 = vmatmul.f32.gmra.mxu2 %v2591_v59  ;;  %v2717_v5 = vpop.f32.mrf.mxu2  ;;  %v2719_v6 = vpop.f32.mrf.mxu3 }
  0xce   :  { %446 = vmatmul.f32.gmra.mxu3 %v2591_v59  ;;  %559 = vmatmul.f32.gmra.mxu0 %v2713_v56  ;;  %v1993_v36 = vmul.f32 -1.442695, %v2717_v5 }
  0xd0   :  { %v2723_v39 = vpop.f32.mrf.mxu1  ;;  %v2725_v7 = vpop.f32.mrf.mxu0 }
  0xd5   :  { %319 = vmatmul.f32.gmra.mxu1 %v2603_v15  ;;  %384 = vmatmul.f32.gmra.mxu2 %v2603_v15 }
  0xd6   :  { %449 = vmatmul.f32.gmra.mxu3 %v2603_v15  ;;  %562 = vmatmul.f32.gmra.mxu0 %v112_v9 }
  0xd7   :  { %v2730_v12 = vpop.f32.mrf.mxu2  ;;  %v2732_v59 = vpop.f32.mrf.mxu3 }
  0xda   :  { %v2734_v21 = vpop.f32.mrf.mxu1 }
  0xdb   :  { %v2736_v23 = vpop.f32.mrf.mxu0 }
  0xdd   :  { %582 = vmatmul.f32.vlgmr.msra.gmra.mxu1 %v2609_v40  ;;  %647 = vmatmul.f32.vlgmr.msra.gmra.mxu2 %v2609_v40 }
  0xde   :  { %744 = vmatmul.f32.vlgmr.msra.gmra.mxu3 %v113_v37  ;;  %809 = vmatmul.f32.vlgmr.msra.gmra.mxu0 %v113_v37 }
  0xe0   :  { %v2740_v15 = vpop.f32.mrf.mxu2 }
  0xe1   :  { %4326 = vst [vmem:[#allocation17_spill] sm:$0xff] %v2740_v15  ;;  %v2742_v25 = vpop.f32.mrf.mxu3  ;;  %v120_v15 = vld [vmem:[#allocation7 + $0x38] sm:$0xff] }
  0xe2   :  { %v2744_v26 = vpop.f32.mrf.mxu1 }
  0xe3   :  { %v2746_v27 = vpop.f32.mrf.mxu0 }
  0xe5   :  { %585 = vmatmul.f32.gmra.mxu1 %v2615_v52  ;;  %650 = vmatmul.f32.gmra.mxu2 %v2615_v52  ;;  %v1987_v52 = vmul.f32 -1.442695, %v2675_v38  ;;  %v2089_v38 = vpop.eup %2088 }
  0xe6   :  { %747 = vmatmul.f32.gmra.mxu3 %v114_v57  ;;  %812 = vmatmul.f32.gmra.mxu0 %v114_v57  ;;  %v2779_v54 = vadd.f32 1.0, %v2089_v38 }
  0xe7   :  { %2090 = vpow2.f32 %v1987_v52 }
  0xe8   :  { %v2750_v29 = vpop.f32.mrf.mxu2  ;;  %vm927_vm0 = vweird.f32 %v2779_v54 }
  0xe9   :  { %4327 = vst [vmem:[#allocation18_spill] sm:$0xff] %v2750_v29  ;;  %v2752_v40 = vpop.f32.mrf.mxu3 }
  0xea   :  { %v2754_v13 = vpop.f32.mrf.mxu1 }
  0xeb   :  { %v2756_v32 = vpop.f32.mrf.mxu0 }
  0xed   :  { %588 = vmatmul.f32.gmra.mxu1 %v2621_v0  ;;  %653 = vmatmul.f32.gmra.mxu2 %v2621_v0  ;;  %v1991_v0 = vmul.f32 -1.442695, %v2685_v47  ;;  %v2091_v51 = vpop.eup %2090 }
  0xee   :  { %750 = vmatmul.f32.gmra.mxu3 %v115_v33  ;;  %815 = vmatmul.f32.gmra.mxu0 %v115_v33  ;;  %v2786_v48 = vadd.f32 1.0, %v2091_v51 }
  0xef   :  { %2092 = vpow2.f32 %v1991_v0 }
  0xf0   :  { %v2762_v35 = vpop.f32.mrf.mxu2  ;;  %2094 = vpow2.f32 %v1995_v42  ;;  %vm987_vm2 = vweird.f32 %v2786_v48 }
  0xf1   :  { %4328 = vst [vmem:[#allocation19_spill] sm:$0xff] %v2762_v35  ;;  %v2764_v43 = vpop.f32.mrf.mxu3  ;;  %2096 = vpow2.f32 %v1984_v46 }
  0xf2   :  { %v2766_v44 = vpop.f32.mrf.mxu1  ;;  %2098 = vrcp.f32 %v2779_v54 }
  0xf3   :  { %v2768_v45 = vpop.f32.mrf.mxu0 }
  0xf5   :  { %591 = vmatmul.f32.gmra.mxu1 %v2627_v4  ;;  %656 = vmatmul.f32.gmra.mxu2 %v2627_v4  ;;  %v1988_v4 = vmul.f32 -1.442695, %v2691_v53  ;;  %v2093_v61 = vpop.eup %2092 }
  0xf6   :  { %753 = vmatmul.f32.gmra.mxu3 %v116_v58  ;;  %818 = vmatmul.f32.gmra.mxu0 %v116_v58  ;;  %v2095_v53 = vpop.eup %2094  ;;  %v2800_v11 = vadd.f32 1.0, %v2093_v61  ;;  %v1996_v58 = vmul.f32 -1.442695, %v2703_v1  ;;  %v119_v61 = vld [vmem:[#allocation7 + $0x30] sm:$0xff] }
  0xf7   :  { %2100 = vpow2.f32 %v1988_v4  ;;  %v2097_v10 = vpop.eup %2096  ;;  %v2806_v37 = vadd.f32 1.0, %v2095_v53 }
  0xf8   :  { %v2775_v49 = vpop.f32.mrf.mxu2  ;;  %2102 = vrcp.f32 %v2786_v48  ;;  %v2804_v22 = vpop.eup %2098  ;;  %v2808_v33 = vadd.f32 1.0, %v2097_v10 }
  0xf9   :  { %4329 = vst [vmem:[#allocation20_spill] sm:$0xff] %v2775_v49  ;;  %v2777_v50 = vpop.f32.mrf.mxu3  ;;  %2104 = vpow2.f32 %v1985_v14  ;;  %v923_v52 = vmul.f32 %v2804_v22, %v2779_v54  ;;  %vm928_vm1 = vweird.f32 %v2804_v22 }
  0xfa   :  { %v2781_v55 = vpop.f32.mrf.mxu1  ;;  %2106 = vpow2.f32 %v1989_v3  ;;  %v1997_v3 = vmul.f32 -1.442695, %v2719_v6  ;;  %v1986_v6 = vmul.f32 -1.442695, %v2725_v7  ;;  %v991_v7 = vand.u32 2147483647, %v2786_v48  ;;  %vm2883_vm3 = vmor %vm927_vm0, %vm928_vm1 }
  0xfb   :  { %v2784_v47 = vpop.f32.mrf.mxu0  ;;  %2108 = vrcp.f32 %v2800_v11  ;;  %v924_v4 = vsub.f32 1.0, %v923_v52  ;;  %vm942_vm7 = vweird.f32 %v2808_v33 }
  0xfc   :  { %2110 = vrcp.f32 %v2806_v37  ;;  %vm2906_vm6 = vcmp.eq.f32.partialorder %v991_v7, 8.507059e+37 }
  0xfd   :  { %594 = vmatmul.f32.gmra.mxu1 %v2633_v8  ;;  %659 = vmatmul.f32.gmra.mxu2 %v2633_v8  ;;  %v2101_v57 = vpop.eup %2100  ;;  %2112 = vrcp.f32 %v2808_v33  ;;  %v925_v52 = vmul.f32 %v2804_v22, %v924_v4 }
  0xfe   :  { %756 = vmatmul.f32.gmra.mxu3 %v117_v60  ;;  %821 = vmatmul.f32.gmra.mxu0 %v117_v60  ;;  %v2813_v18 = vpop.eup %2102  ;;  %v2820_v38 = vadd.f32 1.0, %v2101_v57  ;;  %2114 = vpow2.f32 %v1992_v19 }
  0xff   :  { %v2105_v0 = vpop.eup %2104  ;;  %v983_v1 = vmul.f32 %v2813_v18, %v2786_v48  ;;  %2116 = vpow2.f32 %v1996_v58  ;;  %v926_v49 = vadd.f32 %v2804_v22, %v925_v52  ;;  %vm988_vm5 = vweird.f32 %v2813_v18 }
 0x100   :  { %v2792_v62 = vpop.f32.mrf.mxu2  ;;  %v2107_v51 = vpop.eup %2106  ;;  %v2832_v60 = vadd.f32 1.0, %v2105_v0  ;;  %2118 = vrcp.f32 %v2820_v38  ;;  %v931_v0 = vand.u32 2147483647, %v2779_v54  ;;  %vm2950_vm9 = vmor %vm987_vm2, %vm988_vm5  ;;  %vm1002_vm11 = vweird.f32 %v2820_v38 }
 0x101   :  { %4330 = vst [vmem:[#allocation21_spill] sm:$0xff] %v2792_v62  ;;  %v2796_v9 = vpop.f32.mrf.mxu3  ;;  %v2837_v53 = vpop.eup %2108  ;;  %v2844_v10 = vadd.f32 1.0, %v2107_v51  ;;  %2120 = vpow2.f32 %v1993_v36  ;;  %v984_v19 = vsub.f32 1.0, %v983_v1  ;;  %v933_v36 = vand.u32 2147483648, %v2779_v54 }
 0x102   :  { %4331 = vst [vmem:[#allocation22_spill] sm:$0xff] %v2796_v9  ;;  %v2798_v8 = vpop.f32.mrf.mxu1  ;;  %v2842_v5 = vpop.eup %2110  ;;  %2122 = vrcp.f32 %v2832_v60  ;;  %vm2887_vm4 = vcmp.eq.f32.partialorder %v931_v0, 8.507059e+37  ;;  %v2896_v52 = vmul.f32 %v2837_v53, %v2800_v11  ;;  %v961_v0 = vand.u32 2147483647, %v2832_v60 }
 0x103   :  { %v2802_v2 = vpop.f32.mrf.mxu0  ;;  %v2847_v57 = vpop.eup %2112  ;;  %2124 = vpow2.f32 %v1997_v3  ;;  %v985_v35 = vmul.f32 %v2813_v18, %v984_v19  ;;  %v2900_v54 = vmul.f32 %v2842_v5, %v2806_v37  ;;  %vm957_vm14 = vweird.f32 %v2832_v60 }
 0x104   :  { %v2115_v58 = vpop.eup %2114  ;;  %2126 = vrcp.f32 %v2844_v10  ;;  %vm943_vm10 = vweird.f32 %v2847_v57  ;;  %vm3035_vm1 = vcmp.eq.f32.partialorder %v961_v0, 8.507059e+37 }
 0x105   :  { %597 = vmatmul.f32.gmra.mxu1 %v2639_v20  ;;  %662 = vmatmul.f32.gmra.mxu2 %v2639_v20  ;;  %v2873_v62 = vadd.f32 1.0, %v2115_v58  ;;  %2128 = vpow2.f32 %v1986_v6  ;;  %v934_v6 = vor.u32 1.1754944e-38, %v933_v36  ;;  %v986_v7 = vadd.f32 %v2813_v18, %v985_v35  ;;  %vm2992_vm12 = vmor %vm942_vm7, %vm943_vm10 }
 0x106   :  { %759 = vmatmul.f32.gmra.mxu3 %v118_v17  ;;  %824 = vmatmul.f32.gmra.mxu0 %v118_v17  ;;  %v993_v17 = vand.u32 2147483648, %v2786_v48  ;;  %v121_v48 = vld [vmem:[#allocation7 + $0x40] sm:$0xff] }
 0x108   :  { %v2822_v42 = vpop.f32.mrf.mxu2  ;;  %v2869_v3 = vor.u32 1.1754944e-38, %v993_v17 }
 0x109   :  { %4332 = vst [vmem:[#allocation23_spill] sm:$0xff] %v2822_v42  ;;  %v2825_v20 = vpop.f32.mrf.mxu3  ;;  %v2117_v42 = vpop.eup %2116 }
 0x10a   :  { %4333 = vst [vmem:[#allocation24_spill] sm:$0xff] %v2825_v20  ;;  %v2828_v46 = vpop.f32.mrf.mxu1  ;;  %v2863_v1 = vpop.eup %2118  ;;  %v946_v20 = vand.u32 2147483647, %v2808_v33 }
 0x10b   :  { %4334 = vst [vmem:[#allocation25_spill] sm:$0xff] %v2828_v46  ;;  %v2834_v14 = vpop.f32.mrf.mxu0  ;;  %v998_v58 = vmul.f32 %v2863_v1, %v2820_v38  ;;  %vm1003_vm13 = vweird.f32 %v2863_v1 }
 0x10c   :  { %4335 = vst [vmem:[#allocation26_spill] sm:$0xff] %v2834_v14  ;;  %vm2942_vm8 = vcmp.eq.f32.partialorder %v946_v20, 8.507059e+37  ;;  %v990_v20 = vsel %vm2950_vm9, %v2813_v18, %v986_v7  ;;  %vm3043_vm2 = vmor %vm1002_vm11, %vm1003_vm13 }
 0x10d   :  { %600 = vmatmul.f32.gmra.mxu1 %v2645_v24  ;;  %665 = vmatmul.f32.gmra.mxu2 %v2645_v24  ;;  %v1990_v24 = vmul.f32 -1.442695, %v2723_v39  ;;  %v938_v39 = vmul.f32 %v2847_v57, %v2808_v33 }
 0x10e   :  { %762 = vmatmul.f32.gmra.mxu3 %v119_v61  ;;  %827 = vmatmul.f32.gmra.mxu0 %v119_v61  ;;  %v1994_v61 = vmul.f32 -1.442695, %v2730_v12 }
 0x10f   :  { %2130 = vpow2.f32 %v1990_v24  ;;  %v2904_v24 = vadd.f32 1.0, %v2117_v42  ;;  %v939_v36 = vsub.f32 1.0, %v938_v39  ;;  %v930_v42 = vsel %vm2883_vm3, %v2804_v22, %v926_v49 }
 0x110   :  { %v2855_v51 = vpop.f32.mrf.mxu2  ;;  %2132 = vpow2.f32 %v1994_v61  ;;  %v999_v22 = vsub.f32 1.0, %v998_v58  ;;  %v1162_v58 = vadd.f32 %v2736_v23, %v2734_v21 }
 0x111   :  { %4336 = vst [vmem:[#allocation27_spill] sm:$0xff] %v2855_v51  ;;  %v2861_v4 = vpop.f32.mrf.mxu3  ;;  %2134 = vrcp.f32 %v2873_v62  ;;  %v940_v46 = vmul.f32 %v2847_v57, %v939_v36 }
 0x112   :  { %4337 = vst [vmem:[#allocation28_spill] sm:$0xff] %v2861_v4  ;;  %v2871_v51 = vpop.f32.mrf.mxu1  ;;  %v2121_v4 = vpop.eup %2120  ;;  %2136 = vrcp.f32 %v2904_v24  ;;  %v1000_v7 = vmul.f32 %v2863_v1, %v999_v22 }
 0x113   :  { %4338 = vst [vmem:[#allocation29_spill] sm:$0xff] %v2871_v51  ;;  %v2877_v29 = vpop.f32.mrf.mxu0  ;;  %v2892_v19 = vpop.eup %2122  ;;  %v2924_v61 = vadd.f32 1.0, %v2121_v4  ;;  %v2939_v4 = vsel %vm2887_vm4, %v934_v6, %v930_v42  ;;  %v1998_v6 = vmul.f32 -1.442695, %v2732_v59  ;;  %vm1017_vm4 = vweird.f32 %v2844_v10 }
 0x114   :  { %4339 = vst [vmem:[#allocation30_spill] sm:$0xff] %v2877_v29  ;;  %v2125_v29 = vpop.eup %2124  ;;  %v953_v39 = vmul.f32 %v2892_v19, %v2832_v60  ;;  %vm958_vm15 = vweird.f32 %v2892_v19 }
 0x115   :  { %603 = vmatmul.f32.gmra.mxu1 %v2651_v28  ;;  %668 = vmatmul.f32.gmra.mxu2 %v2651_v28  ;;  %v2920_v28 = vpop.eup %2126  ;;  %v2935_v14 = vadd.f32 1.0, %v2125_v29  ;;  %2138 = vrcp.f32 %v2924_v61  ;;  %vm3059_vm3 = vmor %vm957_vm14, %vm958_vm15  ;;  %vm1077_vm11 = vweird.f32 %v2924_v61  ;;  %vm1048_vm14 = vweird.f32 %v2837_v53 }
 0x116   :  { %765 = vmatmul.f32.gmra.mxu3 %v120_v15  ;;  %830 = vmatmul.f32.gmra.mxu0 %v120_v15  ;;  %v948_v15 = vand.u32 2147483648, %v2808_v33  ;;  %v2129_v9 = vpop.eup %2128  ;;  %v1013_v17 = vmul.f32 %v2920_v28, %v2844_v10  ;;  %v954_v35 = vsub.f32 1.0, %v953_v39  ;;  %v963_v39 = vand.u32 2147483648, %v2832_v60 }
 0x117   :  { %v2131_v51 = vpop.eup %2130  ;;  %v2963_v49 = vadd.f32 1.0, %v2129_v9  ;;  %2140 = vrcp.f32 %v2935_v14  ;;  %v941_v9 = vadd.f32 %v2847_v57, %v940_v46  ;;  %v1999_v33 = vmul.f32 -1.442695, %v1162_v58 }
 0x118   :  { %v2928_v56 = vpop.f32.mrf.mxu2  ;;  %v2133_v42 = vpop.eup %2132  ;;  %v2969_v59 = vadd.f32 1.0, %v2131_v51  ;;  %v949_v18 = vor.u32 1.1754944e-38, %v948_v15  ;;  %v2982_v51 = vsel %vm2906_vm6, %v2869_v3, %v990_v20  ;;  %v1014_v23 = vsub.f32 1.0, %v1013_v17 }
 0x119   :  { %4346 = vst [vmem:[#allocation31_spill] sm:$0xff] %v2928_v56  ;;  %v2933_v12 = vpop.f32.mrf.mxu3  ;;  %v2967_v63 = vpop.eup %2134  ;;  %v2986_v15 = vadd.f32 1.0, %v2133_v42  ;;  %2142 = vpow2.f32 %v1998_v6  ;;  %v955_v3 = vmul.f32 %v2892_v19, %v954_v35  ;;  %v945_v35 = vsel %vm2992_vm12, %v2847_v57, %v941_v9 }
 0x11a   :  { %4347 = vst [vmem:[#allocation32_spill] sm:$0xff] %v2933_v12  ;;  %v299_v29 = vpop.f32.mrf.mxu1  ;;  %v2984_v21 = vpop.eup %2136  ;;  %v2999_v46 = vmul.f32 %v2967_v63, %v2873_v62  ;;  %2144 = vrcp.f32 %v2963_v49  ;;  %v1163_v42 = vadd.f32 %v2746_v27, %v2744_v26  ;;  %v4358_v58 = vand.u32 2147483647, %v2820_v38 }
 0x11b   :  { %v542_v36 = vpop.f32.mrf.mxu0  ;;  %4353 = vst [vmem:[#allocation34_spill] sm:$0xff] %v2982_v51  ;;  %2146 = vrcp.f32 %v2969_v59  ;;  %v3011_v6 = vpop.eup %2138  ;;  %v3015_v20 = vmul.f32 %v2984_v21, %v2904_v24  ;;  %v4368_v60 = vand.u32 2147483648, %v2820_v38  ;;  %vm1018_vm5 = vweird.f32 %v2920_v28 }
 0x11c   :  { %v2965_v12 = vadd.f32 %v542_v36, %v299_v29  ;;  %v1001_v29 = vadd.f32 %v2863_v1, %v1000_v7  ;;  %v964_v36 = vor.u32 1.1754944e-38, %v963_v39  ;;  %2148 = vrcp.f32 %v2986_v15  ;;  %vm3115_vm7 = vmor %vm1017_vm4, %vm1018_vm5 }
 0x11d   :  { %606 = vmatmul.f32.gmra.mxu1 %v2657_v30  ;;  %671 = vmatmul.f32.gmra.mxu2 %v2657_v30  ;;  %vm3026_vm0 = vcmp.eq.f32.partialorder %v4358_v58, 8.507059e+37  ;;  %v122_v30 = vld [vmem:[#allocation7 + $0x48] sm:$0xff]  ;;  %v3031_v57 = vpop.eup %2140  ;;  %v956_v39 = vadd.f32 %v2892_v19, %v955_v3  ;;  %v1073_v58 = vmul.f32 %v3011_v6, %v2924_v61  ;;  %2150 = vpow2.f32 %v1999_v33 }
 0x11e   :  { %4352 = vst [vmem:[#allocation33_spill] sm:$0xff] %v2965_v12  ;;  %768 = vmatmul.f32.gmra.mxu3 %v121_v48  ;;  %833 = vmatmul.f32.gmra.mxu0 %v121_v48  ;;  %v3053_v3 = vsel %vm2942_vm8, %v949_v18, %v945_v35  ;;  %v978_v18 = vand.u32 2147483648, %v2963_v49  ;;  %v1009_v35 = vor.u32 1.1754944e-38, %v4368_v60  ;;  %v3082_v26 = vmul.f32 %v3031_v57, %v2935_v14 }
 0x11f   :  { %v960_v38 = vsel %vm3059_vm3, %v2892_v19, %v956_v39  ;;  %v1074_v56 = vsub.f32 1.0, %v1073_v58  ;;  %v976_v12 = vand.u32 2147483647, %v2963_v49  ;;  %vm1047_vm6 = vweird.f32 %v2800_v11 }
 0x120   :  { %v3004_v22 = vpop.f32.mrf.mxu2  ;;  %2152 = vtanh.f32 %v2742_v25  ;;  %v3109_v58 = vor.u32 1.1754944e-38, %v978_v18  ;;  %v3121_v0 = vsel %vm3035_vm1, %v964_v36, %v960_v38  ;;  %v123_v18 = vld [vmem:[#allocation7 + $0x50] sm:$0xff]  ;;  %vm972_vm9 = vweird.f32 %v2963_v49 }
 0x121   :  { %4356 = vst [vmem:[#allocation35_spill] sm:$0xff] %v3004_v22  ;;  %v3009_v17 = vpop.f32.mrf.mxu3  ;;  %v1015_v22 = vmul.f32 %v2920_v28, %v1014_v23  ;;  %v2143_v23 = vpop.eup %2142  ;;  %vm1078_vm12 = vweird.f32 %v3011_v6  ;;  %vm1032_vm13 = vweird.f32 %v2969_v59  ;;  %vm3180_vm1 = vcmp.eq.f32.partialorder %v976_v12, 8.507059e+37 }
 0x122   :  { %4357 = vst [vmem:[#allocation36_spill] sm:$0xff] %v3009_v17  ;;  %v302_v48 = vpop.f32.mrf.mxu1  ;;  %v3068_v33 = vpop.eup %2144  ;;  %v3096_v9 = vadd.f32 1.0, %v2143_v23 }
 0x123   :  { %v545_v17 = vpop.f32.mrf.mxu0  ;;  %v968_v7 = vmul.f32 %v3068_v33, %v2963_v49  ;;  %vm973_vm10 = vweird.f32 %v3068_v33  ;;  %v4387_v49 = vsub.f32 1.0, %v2999_v46 }
 0x124   :  { %v3047_v27 = vadd.f32 %v545_v17, %v302_v48  ;;  %v1005_v17 = vsel %vm3043_vm2, %v2863_v1, %v1001_v29  ;;  %v3075_v48 = vpop.eup %2146  ;;  %v2000_v1 = vmul.f32 -1.442695, %v1163_v42  ;;  %v1016_v29 = vadd.f32 %v2920_v28, %v1015_v22  ;;  %vm3196_vm2 = vmor %vm1047_vm6, %vm1048_vm14 }
 0x125   :  { %609 = vmatmul.f32.gmra.mxu1 %v2663_v31  ;;  %674 = vmatmul.f32.gmra.mxu2 %v2663_v31  ;;  %v1021_v31 = vand.u32 2147483647, %v2844_v10  ;;  %v1023_v42 = vand.u32 2147483648, %v2844_v10  ;;  %v3094_v22 = vpop.eup %2148  ;;  %v1028_v39 = vmul.f32 %v3075_v48, %v2969_v59  ;;  %vm1033_vm15 = vweird.f32 %v3075_v48  ;;  %vm3227_vm5 = vmor %vm972_vm9, %vm973_vm10 }
 0x126   :  { %4365 = vst [vmem:[#allocation37_spill] sm:$0xff] %v3047_v27  ;;  %771 = vmatmul.f32.gmra.mxu3 %v122_v30  ;;  %836 = vmatmul.f32.gmra.mxu0 %v122_v30  ;;  %v3089_v30 = vsel %vm3026_vm0, %v1009_v35, %v1005_v17  ;;  %v1164_v27 = vadd.f32 %v2756_v32, %v2754_v13  ;;  %v2151_v23 = vpop.eup %2150  ;;  %2154 = vpow2.f32 %v2000_v1  ;;  %v4374_v13 = vsub.f32 1.0, %v2896_v52  ;;  %vm3170_vm0 = vmor %vm1077_vm11, %vm1078_vm12  ;;  %v124_v35 = vld [vmem:[#allocation7 + $0x58] sm:$0xff] }
 0x127   :  { %v1020_v25 = vsel %vm3115_vm7, %v2920_v28, %v1016_v29  ;;  %vm3126_vm8 = vcmp.eq.f32.partialorder %v1021_v31, 8.507059e+37  ;;  %v1024_v51 = vor.u32 1.1754944e-38, %v1023_v42  ;;  %2156 = vrcp.f32 %v3096_v9 }
 0x128   :  { %v3092_v60 = vpop.f32.mrf.mxu2  ;;  %v2001_v1 = vmul.f32 -1.442695, %v1164_v27  ;;  %v1075_v28 = vmul.f32 %v3011_v6, %v1074_v56  ;;  %v969_v29 = vsub.f32 1.0, %v968_v7  ;;  %v1029_v31 = vsub.f32 1.0, %v1028_v39 }
 0x129   :  { %4369 = vst [vmem:[#allocation38_spill] sm:$0xff] %v3092_v60  ;;  %v3102_v19 = vpop.f32.mrf.mxu3  ;;  %v1088_v60 = vmul.f32 %v3094_v22, %v2986_v15  ;;  %v3141_v38 = vadd.f32 1.0, %v2151_v23  ;;  %v3145_v42 = vsel %vm3126_vm8, %v1024_v51, %v1020_v25  ;;  %v1038_v27 = vand.u32 2147483648, %v2969_v59  ;;  %vm3253_vm8 = vmor %vm1032_vm13, %vm1033_vm15 }
 0x12a   :  { %v305_v32 = vpop.f32.mrf.mxu1  ;;  %v1036_v7 = vand.u32 2147483647, %v2969_v59  ;;  %v1083_v23 = vand.u32 2147483648, %v2924_v61  ;;  %2158 = vpow2.f32 %v2001_v1  ;;  %v1165_v52 = vadd.f32 %v2768_v45, %v2766_v44 }
 0x12b   :  { %v548_v10 = vpop.f32.mrf.mxu0  ;;  %v1089_v56 = vsub.f32 1.0, %v1088_v60  ;;  %v1081_v60 = vand.u32 2147483647, %v2924_v61  ;;  %v1030_v51 = vmul.f32 %v3075_v48, %v1029_v31  ;;  %v3184_v31 = vor.u32 1.1754944e-38, %v1038_v27 }
 0x12c   :  { %v3134_v36 = vadd.f32 %v548_v10, %v305_v32  ;;  %v1045_v32 = vmul.f32 %v2837_v53, %v4374_v13  ;;  %v1076_v10 = vadd.f32 %v3011_v6, %v1075_v28  ;;  %vm3202_vm3 = vcmp.eq.f32.partialorder %v1036_v7, 8.507059e+37 }
 0x12d   :  { %612 = vmatmul.f32.gmra.mxu1 %v2669_v34  ;;  %677 = vmatmul.f32.gmra.mxu2 %v2669_v34  ;;  %v2153_v34 = vpop.eup %2152  ;;  %vm3209_vm4 = vcmp.eq.f32.partialorder %v1081_v60, 8.507059e+37  ;;  %v1053_v60 = vand.u32 2147483648, %v2800_v11  ;;  %vm1092_vm6 = vweird.f32 %v2986_v15  ;;  %vm1093_vm7 = vweird.f32 %v3094_v22 }
 0x12e   :  { %774 = vmatmul.f32.gmra.mxu3 %v123_v18  ;;  %839 = vmatmul.f32.gmra.mxu0 %v123_v18  ;;  %v2155_v25 = vpop.eup %2154  ;;  %v970_v18 = vmul.f32 %v3068_v33, %v969_v29  ;;  %v3178_v28 = vmul.f32 %v2153_v34, %v2939_v4  ;;  %v3187_v61 = vadd.f32 %v2837_v53, %v1045_v32  ;;  %v1084_v4 = vor.u32 1.1754944e-38, %v1083_v23  ;;  %vm3270_vm11 = vmor %vm1092_vm6, %vm1093_vm7 }
 0x12f   :  { %v3174_v45 = vpop.eup %2156  ;;  %v2002_v34 = vmul.f32 -1.442695, %v1165_v52  ;;  %v1090_v23 = vmul.f32 %v3094_v22, %v1089_v56  ;;  %vm1062_vm9 = vweird.f32 %v2873_v62  ;;  %vm1063_vm10 = vweird.f32 %v2967_v63 }
 0x130   :  { %v3156_v39 = vpop.f32.mrf.mxu2  ;;  %v3218_v7 = vmul.f32 %v3174_v45, %v3096_v9  ;;  %v971_v52 = vadd.f32 %v3068_v33, %v970_v18  ;;  %v1060_v18 = vmul.f32 %v2967_v63, %v4387_v49  ;;  %vm3291_vm13 = vmor %vm1062_vm9, %vm1063_vm10  ;;  %v1054_v29 = vor.u32 1.1754944e-38, %v1053_v60 }
 0x131   :  { %v435_v17 = vpop.f32.mrf.mxu3  ;;  %vm1138_vm6 = vweird.f32 %v3031_v57  ;;  %vm1137_vm9 = vweird.f32 %v2935_v14 }
 0x132   :  { %2160 = vtanh.f32 %v435_v17  ;;  %v308_v44 = vpop.f32.mrf.mxu1  ;;  %v3189_v17 = vadd.f32 1.0, %v2155_v25  ;;  %vm3449_vm10 = vmor %vm1137_vm9, %vm1138_vm6 }
 0x133   :  { %2162 = vrcp.f32 %v3141_v38  ;;  %v551_v13 = vpop.f32.mrf.mxu0 }
 0x134   :  { %2164 = vtanh.f32 %v2752_v40  ;;  %v3200_v27 = vadd.f32 %v551_v13, %v308_v44  ;;  %v1080_v40 = vsel %vm3170_vm0, %v3011_v6, %v1076_v10  ;;  %v1031_v44 = vadd.f32 %v3075_v48, %v1030_v51  ;;  %v2159_v10 = vpop.eup %2158 }
 0x135   :  { %615 = vmatmul.f32.gmra.mxu1 %v2677_v41  ;;  %680 = vmatmul.f32.gmra.mxu2 %v2677_v41  ;;  %v1051_v6 = vand.u32 2147483647, %v2800_v11  ;;  %2166 = vrcp.f32 %v3189_v17  ;;  %v1085_v51 = vsel %vm3209_vm4, %v1084_v4, %v1080_v40  ;;  %v1098_v13 = vand.u32 2147483648, %v2986_v15 }
 0x136   :  { %777 = vmatmul.f32.gmra.mxu3 %v124_v35  ;;  %842 = vmatmul.f32.gmra.mxu0 %v124_v35  ;;  %2168 = vpow2.f32 %v2002_v34  ;;  %v1091_v4 = vadd.f32 %v3094_v22, %v1090_v23  ;;  %v1096_v40 = vand.u32 2147483647, %v2986_v15  ;;  %v975_v34 = vsel %vm3227_vm5, %v3068_v33, %v971_v52 }
 0x137   :  { %v1166_v41 = vadd.f32 %v2784_v47, %v2781_v55  ;;  %v1035_v33 = vsel %vm3253_vm8, %v3075_v48, %v1031_v44  ;;  %vm3281_vm12 = vcmp.eq.f32.partialorder %v1051_v6, 8.507059e+37  ;;  %v1066_v47 = vand.u32 2147483647, %v2873_v62 }
 0x138   :  { %v2161_v35 = vpop.eup %2160  ;;  %v3244_v1 = vpop.f32.mrf.mxu2  ;;  %v1068_v48 = vand.u32 2147483648, %v2873_v62  ;;  %v1095_v44 = vsel %vm3270_vm11, %v3094_v22, %v1091_v4  ;;  %vm3300_vm14 = vcmp.eq.f32.partialorder %v1096_v40, 8.507059e+37  ;;  %v3312_v62 = vsel %vm3180_vm1, %v3109_v58, %v975_v34 }
 0x139   :  { %4388 = vst [vmem:[#allocation39_spill] sm:$0xff] %v3244_v1  ;;  %v3247_v56 = vpop.eup %2162  ;;  %v3257_v46 = vmul.f32 %v2161_v35, %v1085_v51  ;;  %v438_v49 = vpop.f32.mrf.mxu3  ;;  %v3274_v35 = vadd.f32 1.0, %v2159_v10  ;;  %v125_v51 = vld [vmem:[#allocation7 + $0x60] sm:$0xff]  ;;  %v3317_v22 = vsel %vm3202_vm3, %v3184_v31, %v1035_v33  ;;  %v2003_v58 = vmul.f32 -1.442695, %v1166_v41 }
 0x13a   :  { %v2165_v25 = vpop.eup %2164  ;;  %2170 = vtanh.f32 %v438_v49  ;;  %v311_v23 = vpop.f32.mrf.mxu1  ;;  %v1061_v49 = vadd.f32 %v2967_v63, %v1060_v18  ;;  %v1149_v18 = vsub.f32 1.0, %v3218_v7  ;;  %v3324_v4 = vmul.f32 %v3247_v56, %v3141_v38 }
 0x13b   :  { %4391 = vst [vmem:[#allocation40_spill] sm:$0xff] %v3257_v46  ;;  %v554_v15 = vpop.f32.mrf.mxu0  ;;  %2172 = vtanh.f32 %v2764_v43  ;;  %v1099_v46 = vor.u32 1.1754944e-38, %v1098_v13  ;;  %v3306_v6 = vpop.eup %2166  ;;  %v4400_v13 = vsub.f32 1.0, %v2900_v54  ;;  %v3328_v32 = vmul.f32 %v2165_v25, %v3053_v3 }
 0x13c   :  { %v3287_v10 = vadd.f32 %v554_v15, %v311_v23  ;;  %2174 = vrcp.f32 %v3274_v35  ;;  %v1167_v31 = vadd.f32 %v2802_v2, %v2798_v8  ;;  %v1065_v54 = vsel %vm3291_vm13, %v2967_v63, %v1061_v49  ;;  %v126_v49 = vld [vmem:[#allocation7 + $0x68] sm:$0xff] }
 0x13d   :  { %618 = vmatmul.f32.gmra.mxu1 %v2689_v16  ;;  %683 = vmatmul.f32.gmra.mxu2 %v2689_v16  ;;  %v1105_v11 = vmul.f32 %v2842_v5, %v4400_v13  ;;  %v2169_v16 = vpop.eup %2168  ;;  %v1100_v34 = vsel %vm3300_vm14, %v1099_v46, %v1095_v44  ;;  %2176 = vtanh.f32 %v2777_v50  ;;  %vm3340_vm15 = vcmp.eq.f32.partialorder %v1066_v47, 8.507059e+37 }
 0x13e   :  { %780 = vmatmul.f32.gmra.mxu3 %v125_v51  ;;  %845 = vmatmul.f32.gmra.mxu0 %v125_v51  ;;  %v1069_v3 = vor.u32 1.1754944e-38, %v1068_v48  ;;  %v3350_v63 = vmul.f32 %v3306_v6, %v3189_v17  ;;  %vm1108_vm0 = vweird.f32 %v2842_v5  ;;  %v1113_v50 = vand.u32 2147483648, %v2806_v37 }
 0x13f   :  { %v1106_v2 = vadd.f32 %v2842_v5, %v1105_v11  ;;  %v3355_v41 = vadd.f32 1.0, %v2169_v16  ;;  %2178 = vpow2.f32 %v2003_v58  ;;  %v4405_v33 = vsel %vm3196_vm2, %v2837_v53, %v3187_v61  ;;  %v4411_v16 = vld [vmem:[#allocation25_spill] sm:$0xff] }
 0x140   :  { %v2171_v40 = vpop.eup %2170  ;;  %v3337_v59 = vpop.f32.mrf.mxu2  ;;  %v3364_v15 = vsel %vm3281_vm12, %v1054_v29, %v4405_v33  ;;  %v4406_v55 = vsub.f32 1.0, %v3015_v20  ;;  %v2004_v48 = vmul.f32 -1.442695, %v1167_v31  ;;  %vm1107_vm1 = vweird.f32 %v2806_v37 }
 0x141   :  { %4401 = vst [vmem:[#allocation41_spill] sm:$0xff] %v3337_v59  ;;  %v3344_v25 = vmul.f32 %v2171_v40, %v1100_v34  ;;  %v3346_v23 = vpop.f32.mrf.mxu3  ;;  %v2173_v8 = vpop.eup %2172  ;;  %v1111_v44 = vand.u32 2147483647, %v2806_v37  ;;  %v1244_v53 = vsub.f32 1.0, %v3324_v4  ;;  %v3381_v52 = vsel %vm3340_vm15, %v1069_v3, %v1065_v54  ;;  %vm3385_vm2 = vmor %vm1107_vm1, %vm1108_vm0  ;;  %v4409_v37 = vld [vmem:[#allocation15_spill] sm:$0xff]  ;;  %v4412_v4 = vld [vmem:[#allocation26_spill] sm:$0xff] }
 0x142   :  { %v314_v46 = vpop.f32.mrf.mxu1  ;;  %v1120_v47 = vmul.f32 %v2984_v21, %v4406_v55  ;;  %v3373_v12 = vpop.eup %2174  ;;  %v3377_v61 = vmul.f32 %v2173_v8, %v3121_v0  ;;  %v4410_v13 = vsub.f32 1.0, %v3082_v26  ;;  %v1259_v0 = vsub.f32 1.0, %v3350_v63 }
 0x143   :  { %4404 = vst [vmem:[#allocation42_spill] sm:$0xff] %v3344_v25  ;;  %v557_v51 = vpop.f32.mrf.mxu0  ;;  %v1168_v58 = vadd.f32 %v4412_v4, %v4411_v16  ;;  %v1110_v29 = vsel %vm3385_vm2, %v2842_v5, %v1106_v2  ;;  %v1114_v40 = vor.u32 1.1754944e-38, %v1113_v50  ;;  %v2177_v31 = vpop.eup %2176  ;;  %2180 = vrcp.f32 %v3355_v41 }
 0x144   :  { %v3371_v43 = vadd.f32 %v557_v51, %v314_v46  ;;  %v1135_v11 = vmul.f32 %v3031_v57, %v4410_v13  ;;  %v1121_v54 = vadd.f32 %v2984_v21, %v1120_v47  ;;  %vm1123_vm3 = vweird.f32 %v2984_v21  ;;  %v4420_v13 = vld [vmem:[#allocation30_spill] sm:$0xff] }
 0x145   :  { %621 = vmatmul.f32.gmra.mxu1 %v4409_v37  ;;  %686 = vmatmul.f32.gmra.mxu2 %v4409_v37  ;;  %v1126_v26 = vand.u32 2147483647, %v2904_v24  ;;  %v3406_v34 = vmul.f32 %v3373_v12, %v3274_v35  ;;  %2182 = vpow2.f32 %v2004_v48  ;;  %vm1112_vm4 = vcmp.eq.f32.partialorder %v1111_v44, 8.507059e+37  ;;  %v2179_v5 = vpop.eup %2178  ;;  %v127_v48 = vld [vmem:[#allocation7 + $0x70] sm:$0xff] }
 0x146   :  { %783 = vmatmul.f32.gmra.mxu3 %v126_v49  ;;  %848 = vmatmul.f32.gmra.mxu0 %v126_v49  ;;  %vm1122_vm5 = vweird.f32 %v2904_v24  ;;  %v3411_v3 = vsel %vm1112_vm4, %v1114_v40, %v1110_v29  ;;  %v1136_v2 = vadd.f32 %v3031_v57, %v1135_v11  ;;  %v1150_v50 = vmul.f32 %v3174_v45, %v1149_v18  ;;  %v4419_v37 = vld [vmem:[#allocation29_spill] sm:$0xff] }
 0x147   :  { %v3421_v46 = vmul.f32 %v2177_v31, %v3312_v62  ;;  %v2005_v33 = vmul.f32 -1.442695, %v1168_v58  ;;  %vm3425_vm7 = vmor %vm1122_vm5, %vm1123_vm3  ;;  %v1128_v49 = vand.u32 2147483648, %v2904_v24  ;;  %v1143_v47 = vand.u32 2147483648, %v2935_v14  ;;  %v4418_v24 = vld [vmem:[#allocation22_spill] sm:$0xff]  ;;  %v4423_v58 = vld [vmem:[#allocation16_spill] sm:$0xff] }
 0x148   :  { %v3408_v60 = vpop.f32.mrf.mxu2  ;;  %v1125_v7 = vsel %vm3425_vm7, %v2984_v21, %v1121_v54  ;;  %vm3434_vm8 = vcmp.eq.f32.partialorder %v1126_v26, 8.507059e+37  ;;  %v1141_v44 = vand.u32 2147483647, %v2935_v14  ;;  %v3440_v20 = vadd.f32 1.0, %v2179_v5  ;;  %v2376_v14 = vld [vmem:[#allocation5 + $0x70] sm:$0xff]  ;;  %v128_v21 = vld [vmem:[#allocation7 + $0x78] sm:$0xff] }
 0x149   :  { %4413 = vst [vmem:[#allocation15_spill] sm:$0xff] %v3408_v60  ;;  %v3413_v8 = vpop.f32.mrf.mxu3  ;;  %2184 = vtanh.f32 %v4418_v24  ;;  %v1169_v11 = vadd.f32 %v4420_v13, %v4419_v37  ;;  %v3453_v4 = vpop.eup %2180  ;;  %v1140_v29 = vsel %vm3449_vm10, %v3031_v57, %v1136_v2  ;;  %v1151_v40 = vadd.f32 %v3174_v45, %v1150_v50  ;;  %v4430_v13 = vld [vmem:[#allocation24_spill] sm:$0xff] }
 0x14a   :  { %v317_v55 = vpop.f32.mrf.mxu1  ;;  %vm1153_vm11 = vweird.f32 %v3174_v45  ;;  %v1156_v31 = vand.u32 2147483647, %v3096_v9  ;;  %2186 = vpow2.f32 %v2005_v33  ;;  %v1129_v26 = vor.u32 1.1754944e-38, %v1128_v49 }
 0x14b   :  { %v560_v62 = vpop.f32.mrf.mxu0  ;;  %v2183_v54 = vpop.eup %2182  ;;  %v1144_v5 = vor.u32 1.1754944e-38, %v1143_v47  ;;  %v1245_v51 = vmul.f32 %v3247_v56, %v1244_v53  ;;  %vm1142_vm12 = vcmp.eq.f32.partialorder %v1141_v44, 8.507059e+37  ;;  %vm1152_vm13 = vweird.f32 %v3096_v9 }
 0x14c   :  { %v3445_v16 = vadd.f32 %v560_v62, %v317_v55  ;;  %v1274_v55 = vsub.f32 1.0, %v3406_v34  ;;  %v1158_v57 = vand.u32 2147483648, %v3096_v9  ;;  %2188 = vrcp.f32 %v3440_v20  ;;  %vm3475_vm14 = vmor %vm1152_vm13, %vm1153_vm11 }
 0x14d   :  { %624 = vmatmul.f32.gmra.mxu1 %v4423_v58  ;;  %689 = vmatmul.f32.gmra.mxu2 %v2376_v14  ;;  %v2006_v2 = vmul.f32 -1.442695, %v1169_v11  ;;  %v3469_v50 = vsel %vm3434_vm8, %v1129_v26, %v1125_v7  ;;  %v1145_v49 = vsel %vm1142_vm12, %v1144_v5, %v1140_v29  ;;  %v3481_v34 = vmul.f32 %v3453_v4, %v3355_v41  ;;  %v4431_v26 = vld [vmem:[#allocation34_spill] sm:$0xff] }
 0x14e   :  { %786 = vmatmul.f32.gmra.mxu3 %v127_v48  ;;  %851 = vmatmul.f32.gmra.mxu0 %v127_v48  ;;  %v3483_v9 = vadd.f32 1.0, %v2183_v54  ;;  %v1155_v7 = vsel %vm3475_vm14, %v3174_v45, %v1151_v40  ;;  %vm3488_vm15 = vcmp.eq.f32.partialorder %v1156_v31, 8.507059e+37  ;;  %v4429_v48 = vld [vmem:[#allocation33_spill] sm:$0xff]  ;;  %v1246_v37 = vadd.f32 %v3247_v56, %v1245_v51  ;;  %v2377_v51 = vld [vmem:[#allocation5 + $0x78] sm:$0xff] }
 0x14f   :  { %v2185_v62 = vpop.eup %2184  ;;  %v2007_v44 = vmul.f32 -1.442695, %v4429_v48  ;;  %vm1248_vm0 = vweird.f32 %v3247_v56  ;;  %v1159_v58 = vor.u32 1.1754944e-38, %v1158_v57  ;;  %v1251_v45 = vand.u32 2147483647, %v3141_v38 }
 0x150   :  { %v3471_v33 = vpop.f32.mrf.mxu2  ;;  %v1260_v14 = vmul.f32 %v3306_v6, %v1259_v0  ;;  %v2187_v29 = vpop.eup %2186  ;;  %vm1247_vm1 = vweird.f32 %v3141_v38  ;;  %v1253_v31 = vand.u32 2147483648, %v3141_v38  ;;  %v1289_v54 = vsub.f32 1.0, %v3481_v34 }
 0x151   :  { %4424 = vst [vmem:[#allocation25_spill] sm:$0xff] %v3471_v33  ;;  %v447_v47 = vpop.f32.mrf.mxu3  ;;  %v3506_v5 = vmul.f32 %v2185_v62, %v4431_v26  ;;  %v3511_v63 = vsel %vm3488_vm15, %v1159_v58, %v1155_v7  ;;  %vm3515_vm2 = vmor %vm1247_vm1, %vm1248_vm0  ;;  %vm1262_vm3 = vweird.f32 %v3189_v17  ;;  %vm1263_vm4 = vweird.f32 %v3306_v6  ;;  %v4439_v58 = vld [vmem:[#allocation37_spill] sm:$0xff] }
 0x152   :  { %2190 = vtanh.f32 %v447_v47  ;;  %v320_v24 = vpop.f32.mrf.mxu1  ;;  %v3519_v38 = vpop.eup %2188  ;;  %v1250_v57 = vsel %vm3515_vm2, %v3247_v56, %v1246_v37  ;;  %vm3528_vm5 = vcmp.eq.f32.partialorder %v1251_v45, 8.507059e+37  ;;  %v1261_v34 = vadd.f32 %v3306_v6, %v1260_v14  ;;  %v4437_v37 = vld [vmem:[#allocation28_spill] sm:$0xff]  ;;  %vm3554_vm7 = vmor %vm1262_vm3, %vm1263_vm4 }
 0x153   :  { %2192 = vtanh.f32 %v4430_v13  ;;  %v563_v11 = vpop.f32.mrf.mxu0  ;;  %v1275_v47 = vmul.f32 %v3373_v12, %v1274_v55  ;;  %v1254_v62 = vor.u32 1.1754944e-38, %v1253_v31  ;;  %v1266_v56 = vand.u32 2147483647, %v3189_v17 }
 0x154   :  { %2194 = vpow2.f32 %v2006_v2  ;;  %v3500_v40 = vadd.f32 %v563_v11, %v320_v24  ;;  %v3526_v2 = vadd.f32 1.0, %v2187_v29  ;;  %v1268_v48 = vand.u32 2147483648, %v3189_v17 }
 0x155   :  { %2196 = vrcp.f32 %v3483_v9  ;;  %627 = vmatmul.f32.gmra.mxu1 %v2377_v51  ;;  %692 = vmatmul.f32.gmra.mxu2 %v2377_v51  ;;  %vm1277_vm6 = vweird.f32 %v3274_v35  ;;  %v1303_v24 = vmul.f32 %v3519_v38, %v3440_v20  ;;  %v1281_v55 = vand.u32 2147483647, %v3274_v35 }
 0x156   :  { %2198 = vpow2.f32 %v2007_v44  ;;  %789 = vmatmul.f32.gmra.mxu3 %v128_v21  ;;  %854 = vmatmul.f32.gmra.mxu0 %v128_v21  ;;  %v2008_v45 = vmul.f32 -1.442695, %v4439_v58  ;;  %v3548_v29 = vsel %vm3528_vm5, %v1254_v62, %v1250_v57  ;;  %v1265_v51 = vsel %vm3554_vm7, %v3306_v6, %v1261_v34  ;;  %v4447_v58 = vld [vmem:[#allocation17_spill] sm:$0xff] }
 0x157   :  { %2200 = vtanh.f32 %v4437_v37  ;;  %v1276_v0 = vadd.f32 %v3373_v12, %v1275_v47  ;;  %vm1278_vm8 = vweird.f32 %v3373_v12  ;;  %vm1267_vm9 = vcmp.eq.f32.partialorder %v1266_v56, 8.507059e+37 }
 0x158   :  { %v2191_v7 = vpop.eup %2190  ;;  %v3534_v18 = vpop.f32.mrf.mxu2  ;;  %v1269_v53 = vor.u32 1.1754944e-38, %v1268_v48  ;;  %v1304_v62 = vsub.f32 1.0, %v1303_v24  ;;  %vm3573_vm10 = vcmp.eq.f32.partialorder %v1281_v55, 8.507059e+37  ;;  %v1290_v6 = vmul.f32 %v3453_v4, %v1289_v54  ;;  %vm3584_vm11 = vmor %vm1277_vm6, %vm1278_vm8 }
 0x159   :  { %4436 = vst [vmem:[#allocation26_spill] sm:$0xff] %v3534_v18  ;;  %v2193_v44 = vpop.eup %2192  ;;  %v3542_v13 = vmul.f32 %v2191_v7, %v1145_v49  ;;  %v450_v11 = vpop.f32.mrf.mxu3  ;;  %v1283_v49 = vand.u32 2147483648, %v3274_v35  ;;  %v1296_v7 = vand.u32 2147483647, %v3355_v41  ;;  %v1280_v54 = vsel %vm3584_vm11, %v3373_v12, %v1276_v0 }
 0x15a   :  { %v2195_v21 = vpop.eup %2194  ;;  %2202 = vtanh.f32 %v450_v11  ;;  %v583_v14 = vpop.f32.mrf.mxu1  ;;  %v3568_v17 = vmul.f32 %v2193_v44, %v3089_v30  ;;  %v3580_v47 = vsel %vm1267_vm9, %v1269_v53, %v1265_v51  ;;  %vm1292_vm12 = vweird.f32 %v3355_v41  ;;  %v4451_v53 = vld [vmem:[#allocation36_spill] sm:$0xff] }
 0x15b   :  { %4438 = vst [vmem:[#allocation22_spill] sm:$0xff] %v3542_v13  ;;  %v3559_v26 = vpop.eup %2196  ;;  %2204 = vrcp.f32 %v3526_v2  ;;  %v3571_v37 = vadd.f32 1.0, %v2195_v21  ;;  %v1284_v56 = vor.u32 1.1754944e-38, %v1283_v49  ;;  %v1298_v24 = vand.u32 2147483648, %v3355_v41  ;;  %v4446_v21 = vld [vmem:[#allocation32_spill] sm:$0xff] }
 0x15c   :  { %v2199_v57 = vpop.eup %2198  ;;  %v1318_v34 = vmul.f32 %v3559_v26, %v3483_v9  ;;  %2206 = vpow2.f32 %v2008_v45  ;;  %v2009_v35 = vmul.f32 -1.442695, %v3134_v36  ;;  %v1482_v45 = vadd.f32 %v583_v14, %v4447_v58 }
 0x15d   :  { %v2201_v48 = vpop.eup %2200  ;;  %v3588_v44 = vadd.f32 1.0, %v2199_v57  ;;  %2208 = vtanh.f32 %v4446_v21  ;;  %vm1293_vm13 = vweird.f32 %v3453_v4  ;;  %vm3601_vm14 = vcmp.eq.f32.partialorder %v1296_v7, 8.507059e+37 }
 0x15e   :  { %2210 = vrcp.f32 %v3571_v37  ;;  %v2010_v51 = vmul.f32 -1.442695, %v3200_v27  ;;  %v1291_v14 = vadd.f32 %v3453_v4, %v1290_v6  ;;  %v1319_v57 = vsub.f32 1.0, %v1318_v34  ;;  %vm3630_vm15 = vmor %vm1292_vm12, %vm1293_vm13 }
 0x15f   :  { %2212 = vtanh.f32 %v4451_v53  ;;  %v1305_v21 = vmul.f32 %v3519_v38, %v1304_v62  ;;  %v3618_v58 = vsel %vm3573_vm10, %v1284_v56, %v1280_v54  ;;  %v1299_v27 = vor.u32 1.1754944e-38, %v1298_v24 }
 0x160   :  { %v2203_v55 = vpop.eup %2202  ;;  %v3598_v31 = vpop.f32.mrf.mxu2  ;;  %2214 = vrcp.f32 %v3588_v44  ;;  %v3624_v34 = vmul.f32 %v2201_v48, %v3145_v42  ;;  %v1295_v11 = vsel %vm3630_vm15, %v3453_v4, %v1291_v14  ;;  %vm1307_vm0 = vweird.f32 %v3440_v20 }
 0x161   :  { %v3605_v12 = vpop.eup %2204  ;;  %v3610_v0 = vmul.f32 %v2203_v55, %v3511_v63  ;;  %v745_v36 = vpop.f32.mrf.mxu3  ;;  %v1311_v63 = vand.u32 2147483647, %v3440_v20  ;;  %2216 = vpow2.f32 %v2009_v35  ;;  %v1313_v42 = vand.u32 2147483648, %v3440_v20 }
 0x162   :  { %v1498_v30 = vadd.f32 %v1482_v45, %v745_v36  ;;  %v586_v7 = vpop.f32.mrf.mxu1  ;;  %v2207_v55 = vpop.eup %2206  ;;  %v1333_v6 = vmul.f32 %v3605_v12, %v3526_v2  ;;  %2218 = vpow2.f32 %v2010_v51  ;;  %v1306_v48 = vadd.f32 %v3519_v38, %v1305_v21 }
 0x163   :  { %4450 = vst [vmem:[#allocation29_spill] sm:$0xff] %v3610_v0  ;;  %v2209_v56 = vpop.eup %2208  ;;  %vm1308_vm1 = vweird.f32 %v3519_v38  ;;  %v1320_v41 = vmul.f32 %v3559_v26, %v1319_v57  ;;  %v3644_v24 = vadd.f32 1.0, %v2207_v55  ;;  %vm3646_vm2 = vcmp.eq.f32.partialorder %v1311_v63, 8.507059e+37  ;;  %v3657_v55 = vpop.f32.mrf.mxu0 }
 0x164   :  { %v2015_v45 = vmul.f32 -1.442695, %v1498_v30  ;;  %v3642_v54 = vpop.eup %2210  ;;  %v1326_v4 = vand.u32 2147483647, %v3483_v9  ;;  %v1328_v51 = vand.u32 2147483648, %v3483_v9  ;;  %v1334_v14 = vsub.f32 1.0, %v1333_v6  ;;  %vm3672_vm3 = vmor %vm1307_vm0, %vm1308_vm1 }
 0x165   :  { %v2213_v36 = vpop.eup %2212  ;;  %v2011_v53 = vmul.f32 -1.442695, %v3287_v10  ;;  %v4456_v30 = vld [vmem:[#allocation18_spill] sm:$0xff]  ;;  %v3666_v0 = vsel %vm3601_vm14, %v1299_v27, %v1295_v11  ;;  %v1314_v10 = vor.u32 1.1754944e-38, %v1313_v42  ;;  %vm1322_vm4 = vweird.f32 %v3483_v9 }
 0x166   :  { %2220 = vpow2.f32 %v2015_v45  ;;  %v1483_v57 = vadd.f32 %v586_v7, %v4456_v30  ;;  %v3659_v63 = vpop.eup %2214  ;;  %v3662_v45 = vmul.f32 %v2209_v56, %v3317_v22  ;;  %v1310_v49 = vsel %vm3672_vm3, %v3519_v38, %v1306_v48 }
 0x167   :  { %2222 = vtanh.f32 %v3102_v19  ;;  %v2217_v7 = vpop.eup %2216  ;;  %v1321_v27 = vadd.f32 %v3559_v26, %v1320_v41  ;;  %vm1323_vm5 = vweird.f32 %v3559_v26  ;;  %v1348_v20 = vmul.f32 %v3642_v54, %v3571_v37 }
 0x168   :  { %v3655_v21 = vpop.f32.mrf.mxu2  ;;  %4457 = vst [vmem:[#allocation30_spill] sm:$0xff] %v3662_v45  ;;  %v2219_v11 = vpop.eup %2218  ;;  %2224 = vrcp.f32 %v3644_v24  ;;  %vm3685_vm6 = vcmp.eq.f32.partialorder %v1326_v4, 8.507059e+37  ;;  %v1329_v56 = vor.u32 1.1754944e-38, %v1328_v51  ;;  %v1335_v38 = vmul.f32 %v3605_v12, %v1334_v14  ;;  %vm3701_vm7 = vmor %vm1322_vm4, %vm1323_vm5 }
 0x169   :  { %v748_v62 = vpop.f32.mrf.mxu3  ;;  %2226 = vpow2.f32 %v2011_v53  ;;  %v1341_v48 = vand.u32 2147483647, %v3526_v2  ;;  %v3691_v41 = vadd.f32 1.0, %v2217_v7  ;;  %v3697_v19 = vsel %vm3646_vm2, %v1314_v10, %v1310_v49 }
 0x16a   :  { %v1499_v6 = vadd.f32 %v1483_v57, %v748_v62  ;;  %v589_v22 = vpop.f32.mrf.mxu1  ;;  %v1343_v51 = vand.u32 2147483648, %v3526_v2  ;;  %v3707_v14 = vmul.f32 %v2213_v36, %v3364_v15  ;;  %v3709_v7 = vadd.f32 1.0, %v2219_v11 }
 0x16b   :  { %v1325_v35 = vsel %vm3701_vm7, %v3559_v26, %v1321_v27  ;;  %v1349_v10 = vsub.f32 1.0, %v1348_v20  ;;  %v3716_v9 = vmul.f32 %v3659_v63, %v3588_v44  ;;  %vm1337_vm8 = vweird.f32 %v3526_v2  ;;  %v3723_v36 = vpop.f32.mrf.mxu0 }
 0x16c   :  { %v2221_v30 = vpop.eup %2220  ;;  %v2016_v57 = vmul.f32 -1.442695, %v1499_v6  ;;  %v4464_v6 = vld [vmem:[#allocation19_spill] sm:$0xff]  ;;  %v1336_v11 = vadd.f32 %v3605_v12, %v1335_v38  ;;  %vm1338_vm9 = vweird.f32 %v3605_v12  ;;  %vm3727_vm10 = vcmp.eq.f32.partialorder %v1341_v48, 8.507059e+37 }
 0x16d   :  { %v3693_v62 = vadd.f32 1.0, %v2221_v30  ;;  %v2223_v53 = vpop.eup %2222  ;;  %v1484_v49 = vadd.f32 %v589_v22, %v4464_v6  ;;  %v3739_v30 = vsel %vm3685_vm6, %v1329_v56, %v1325_v35  ;;  %v1356_v6 = vand.u32 2147483647, %v3571_v37  ;;  %vm3750_vm11 = vmor %vm1337_vm8, %vm1338_vm9 }
 0x16e   :  { %2228 = vpow2.f32 %v2016_v57  ;;  %v3731_v27 = vpop.eup %2224  ;;  %v3734_v20 = vmul.f32 %v2223_v53, %v3381_v52  ;;  %v1344_v57 = vor.u32 1.1754944e-38, %v1343_v51  ;;  %v1358_v13 = vand.u32 2147483648, %v3571_v37 }
 0x16f   :  { %2230 = vrcp.f32 %v3693_v62  ;;  %v2227_v38 = vpop.eup %2226  ;;  %v1350_v56 = vmul.f32 %v3642_v54, %v1349_v10  ;;  %vm1352_vm12 = vweird.f32 %v3571_v37  ;;  %v2012_v53 = vmul.f32 -1.442695, %v3371_v43 }
 0x170   :  { %v3721_v15 = vpop.f32.mrf.mxu2  ;;  %4467 = vst [vmem:[#allocation16_spill] sm:$0xff] %v3734_v20  ;;  %2232 = vrcp.f32 %v3691_v41  ;;  %v3763_v2 = vmul.f32 %v3731_v27, %v3644_v24  ;;  %vm3771_vm13 = vcmp.eq.f32.partialorder %v1356_v6, 8.507059e+37  ;;  %vm1353_vm14 = vweird.f32 %v3642_v54 }
 0x171   :  { %v751_v22 = vpop.f32.mrf.mxu3  ;;  %2234 = vrcp.f32 %v3709_v7  ;;  %v1589_v33 = vand.u32 2147483648, %v3693_v62  ;;  %vm3803_vm0 = vmor %vm1352_vm12, %vm1353_vm14  ;;  %vm1368_vm1 = vweird.f32 %v3659_v63  ;;  %vm1583_vm2 = vweird.f32 %v3693_v62 }
 0x172   :  { %v1500_v48 = vadd.f32 %v1484_v49, %v751_v22  ;;  %v592_v4 = vpop.f32.mrf.mxu1  ;;  %2236 = vtanh.f32 %v3598_v31  ;;  %v1340_v31 = vsel %vm3750_vm11, %v3605_v12, %v1336_v11  ;;  %v3765_v22 = vadd.f32 1.0, %v2227_v38 }
 0x173   :  { %2238 = vtanh.f32 %v3346_v23  ;;  %v1351_v11 = vadd.f32 %v3642_v54, %v1350_v56  ;;  %v1373_v38 = vand.u32 2147483648, %v3588_v44  ;;  %v3786_v52 = vpop.f32.mrf.mxu0  ;;  %vm1367_vm4 = vweird.f32 %v3588_v44 }
 0x174   :  { %v2229_v51 = vpop.eup %2228  ;;  %v2017_v35 = vmul.f32 -1.442695, %v1500_v48  ;;  %2240 = vtanh.f32 %v3657_v55  ;;  %v1359_v48 = vor.u32 1.1754944e-38, %v1358_v13  ;;  %v3790_v13 = vsel %vm3727_vm10, %v1344_v57, %v1340_v31  ;;  %vm3868_vm11 = vmor %vm1367_vm4, %vm1368_vm1 }
 0x175   :  { %v2231_v49 = vpop.eup %2230  ;;  %v3767_v10 = vadd.f32 1.0, %v2229_v51  ;;  %v4472_v51 = vld [vmem:[#allocation20_spill] sm:$0xff]  ;;  %v3812_v56 = vor.u32 1.1754944e-38, %v1373_v38  ;;  %vm1382_vm12 = vweird.f32 %v3644_v24 }
 0x176   :  { %v1579_v23 = vmul.f32 %v2231_v49, %v3693_v62  ;;  %2242 = vpow2.f32 %v2017_v35  ;;  %v3775_v12 = vpop.eup %2232  ;;  %v1485_v6 = vadd.f32 %v592_v4, %v4472_v51  ;;  %vm1584_vm15 = vweird.f32 %v2231_v49 }
 0x177   :  { %2244 = vrcp.f32 %v3767_v10  ;;  %v3781_v42 = vpop.eup %2234  ;;  %v1587_v51 = vand.u32 2147483647, %v3693_v62  ;;  %v3818_v45 = vmul.f32 %v3775_v12, %v3691_v41  ;;  %vm1585_vm3 = vmor %vm1583_vm2, %vm1584_vm15  ;;  %v1602_v43 = vand.u32 2147483647, %v3767_v10 }
 0x178   :  { %2246 = vpow2.f32 %v2012_v53  ;;  %v1580_v55 = vsub.f32 1.0, %v1579_v23  ;;  %v3784_v35 = vpop.f32.mrf.mxu2  ;;  %v2237_v18 = vpop.eup %2236  ;;  %v1371_v53 = vand.u32 2147483647, %v3588_v44  ;;  %vm1598_vm8 = vweird.f32 %v3767_v10  ;;  %v4481_v44 = vld [vmem:[#allocation23_spill] sm:$0xff] }
 0x179   :  { %2248 = vrcp.f32 %v3765_v22  ;;  %v754_v60 = vpop.f32.mrf.mxu3  ;;  %v3796_v23 = vpop.eup %2238  ;;  %vm1588_vm5 = vcmp.eq.f32.partialorder %v1587_v51, 8.507059e+37  ;;  %vm1603_vm10 = vcmp.eq.f32.partialorder %v1602_v43, 8.507059e+37 }
 0x17a   :  { %v1581_v4 = vmul.f32 %v2231_v49, %v1580_v55  ;;  %v1501_v25 = vadd.f32 %v1485_v6, %v754_v60  ;;  %v595_v26 = vpop.f32.mrf.mxu1  ;;  %v2241_v31 = vpop.eup %2240  ;;  %2250 = vtanh.f32 %v3655_v21  ;;  %v1355_v55 = vsel %vm3803_vm0, %v3642_v54, %v1351_v11 }
 0x17b   :  { %v1882_v6 = vmul.f32 %v2237_v18, %v3548_v29  ;;  %v1590_v54 = vor.u32 1.1754944e-38, %v1589_v33  ;;  %2252 = vtanh.f32 %v3723_v36  ;;  %v3833_v38 = vsel %vm3771_vm13, %v1359_v48, %v1355_v55 }
 0x17c   :  { %v2243_v60 = vpop.eup %2242  ;;  %v1582_v59 = vadd.f32 %v2231_v49, %v1581_v4  ;;  %v2018_v37 = vmul.f32 -1.442695, %v1501_v25  ;;  %v4475_v33 = vsub.f32 1.0, %v3716_v9  ;;  %v1604_v9 = vand.u32 2147483648, %v3767_v10 }
 0x17d   :  { %v2245_v1 = vpop.eup %2244  ;;  %v3820_v21 = vadd.f32 1.0, %v2243_v60  ;;  %v1898_v4 = vadd.f32 %v1882_v6, %v3178_v28  ;;  %vm3848_vm7 = vcmp.eq.f32.partialorder %v1371_v53, 8.507059e+37  ;;  %vm1383_vm13 = vweird.f32 %v3731_v27 }
 0x17e   :  { %v3825_v11 = vpop.eup %2246  ;;  %v1594_v18 = vmul.f32 %v2245_v1, %v3767_v10  ;;  %v1586_v29 = vsel %vm1585_vm3, %v2231_v49, %v1582_v59  ;;  %2254 = vpow2.f32 %v2018_v37  ;;  %v1365_v36 = vmul.f32 %v3659_v63, %v4475_v33  ;;  %v4476_v59 = vld [vmem:[#allocation21_spill] sm:$0xff]  ;;  %v3842_v37 = vpop.f32.mrf.mxu0  ;;  %vm3939_vm4 = vmor %vm1382_vm12, %vm1383_vm13 }
 0x17f   :  { %v3828_v25 = vpop.eup %2248  ;;  %2256 = vrcp.f32 %v3820_v21  ;;  %v1591_v62 = vsel %vm1588_vm5, %v1590_v54, %v1586_v29  ;;  %v1486_v49 = vadd.f32 %v595_v26, %v4476_v59  ;;  %v1394_v54 = vsub.f32 1.0, %v3818_v45 }
 0x180   :  { %v1595_v57 = vsub.f32 1.0, %v1594_v18  ;;  %v1914_v60 = vmul.f32 %v2241_v31, %v1591_v62  ;;  %v3840_v51 = vpop.f32.mrf.mxu2  ;;  %v2251_v20 = vpop.eup %2250  ;;  %2258 = vtanh.f32 %v3413_v8  ;;  %vm1599_vm6 = vweird.f32 %v2245_v1 }
 0x181   :  { %v757_v48 = vpop.f32.mrf.mxu3  ;;  %v2253_v18 = vpop.eup %2252  ;;  %2260 = vtanh.f32 %v3721_v15  ;;  %v1366_v29 = vadd.f32 %v3659_v63, %v1365_v36  ;;  %v1386_v8 = vand.u32 2147483647, %v3644_v24  ;;  %v1388_v62 = vand.u32 2147483648, %v3644_v24  ;;  %vm1600_vm9 = vmor %vm1598_vm8, %vm1599_vm6 }
 0x182   :  { %v1930_v55 = vadd.f32 %v1914_v60, %v1898_v4  ;;  %v1596_v28 = vmul.f32 %v2245_v1, %v1595_v57  ;;  %v1502_v31 = vadd.f32 %v1486_v49, %v757_v48  ;;  %v598_v6 = vpop.f32.mrf.mxu1  ;;  %v1883_v4 = vmul.f32 %v2251_v20, %v3580_v47 }
 0x183   :  { %v2013_v59 = vmul.f32 -1.442695, %v3445_v16  ;;  %v1605_v15 = vor.u32 1.1754944e-38, %v1604_v9  ;;  %2262 = vtanh.f32 %v3786_v52  ;;  %v1370_v52 = vsel %vm3868_vm11, %v3659_v63, %v1366_v29 }
 0x184   :  { %v2255_v33 = vpop.eup %2254  ;;  %1946 = vst [vmem:[#allocation10] sm:$0xff] %v1930_v55  ;;  %v1597_v57 = vadd.f32 %v2245_v1, %v1596_v28  ;;  %v2019_v53 = vmul.f32 -1.442695, %v1502_v31  ;;  %v1899_v10 = vadd.f32 %v1883_v4, %v3328_v32  ;;  %v1487_v55 = vadd.f32 %v598_v6, %v4481_v44 }
 0x185   :  { %v2257_v60 = vpop.eup %2256  ;;  %v3859_v49 = vadd.f32 1.0, %v2255_v33  ;;  %v3898_v4 = vsel %vm3848_vm7, %v3812_v56, %v1370_v52  ;;  %vm1613_vm15 = vweird.f32 %v3820_v21  ;;  %vm3914_vm2 = vcmp.eq.f32.partialorder %v1386_v8, 8.507059e+37 }
 0x186   :  { %v1609_v36 = vmul.f32 %v2257_v60, %v3820_v21  ;;  %v1601_v48 = vsel %vm1600_vm9, %v2245_v1, %v1597_v57  ;;  %2264 = vpow2.f32 %v2019_v53  ;;  %v3872_v16 = vpop.eup %2258  ;;  %v3878_v1 = vor.u32 1.1754944e-38, %v1388_v62  ;;  %v3884_v31 = vpop.f32.mrf.mxu0 }
 0x187   :  { %2266 = vrcp.f32 %v3859_v49  ;;  %v1606_v20 = vsel %vm1603_vm10, %v1605_v15, %v1601_v48  ;;  %v2261_v33 = vpop.eup %2260  ;;  %v1617_v57 = vand.u32 2147483647, %v3820_v21  ;;  %v1619_v53 = vand.u32 2147483648, %v3820_v21 }
 0x188   :  { %v1610_v43 = vsub.f32 1.0, %v1609_v36  ;;  %v1915_v9 = vmul.f32 %v2253_v18, %v1606_v20  ;;  %v3882_v28 = vpop.f32.mrf.mxu2  ;;  %2268 = vpow2.f32 %v2013_v59  ;;  %vm1614_vm14 = vweird.f32 %v2257_v60 }
 0x189   :  { %v760_v15 = vpop.f32.mrf.mxu3  ;;  %v2263_v29 = vpop.eup %2262  ;;  %v3892_v62 = vmul.f32 %v3781_v42, %v3709_v7  ;;  %2270 = vtanh.f32 %v3784_v35  ;;  %v4482_v59 = vsub.f32 1.0, %v3763_v2  ;;  %v1884_v47 = vmul.f32 %v2261_v33, %v3618_v58  ;;  %vm1615_vm0 = vmor %vm1613_vm15, %vm1614_vm14 }
 0x18a   :  { %v1931_v32 = vadd.f32 %v1915_v9, %v1899_v10  ;;  %v1611_v63 = vmul.f32 %v2257_v60, %v1610_v43  ;;  %v1503_v18 = vadd.f32 %v1487_v55, %v760_v15  ;;  %v601_v6 = vpop.f32.mrf.mxu1  ;;  %v3907_v35 = vmul.f32 %v3796_v23, %v3411_v3  ;;  %v4485_v55 = vld [vmem:[#allocation27_spill] sm:$0xff] }
 0x18b   :  { %v1380_v36 = vmul.f32 %v3731_v27, %v4482_v59  ;;  %v1620_v2 = vor.u32 1.1754944e-38, %v1619_v53  ;;  %2272 = vtanh.f32 %v3842_v37  ;;  %vm1618_vm1 = vcmp.eq.f32.partialorder %v1617_v57, 8.507059e+37 }
 0x18c   :  { %v2265_v48 = vpop.eup %2264  ;;  %1947 = vst [vmem:[#allocation10 + $0x8] sm:$0xff] %v1931_v32  ;;  %v1612_v20 = vadd.f32 %v2257_v60, %v1611_v63  ;;  %v2020_v10 = vmul.f32 -1.442695, %v1503_v18  ;;  %v3921_v3 = vadd.f32 1.0, %v3825_v11  ;;  %v1900_v37 = vadd.f32 %v1884_v47, %v3377_v61 }
 0x18d   :  { %v2267_v43 = vpop.eup %2266  ;;  %v3909_v26 = vadd.f32 1.0, %v2265_v48  ;;  %v1381_v9 = vadd.f32 %v3731_v27, %v1380_v36  ;;  %v1488_v33 = vadd.f32 %v601_v6, %v4485_v55  ;;  %v1632_v11 = vand.u32 2147483647, %v3859_v49 }
 0x18e   :  { %v1624_v56 = vmul.f32 %v2267_v43, %v3859_v49  ;;  %v1616_v58 = vsel %vm1615_vm0, %v2257_v60, %v1612_v20  ;;  %2274 = vpow2.f32 %v2020_v10  ;;  %v3918_v52 = vpop.eup %2268  ;;  %v3929_v57 = vpop.f32.mrf.mxu0  ;;  %v1634_v15 = vand.u32 2147483648, %v3859_v49 }
 0x18f   :  { %2276 = vrcp.f32 %v3909_v26  ;;  %v1621_v23 = vsel %vm1618_vm1, %v1620_v2, %v1616_v58  ;;  %v2271_v53 = vpop.eup %2270  ;;  %v1403_v63 = vand.u32 2147483648, %v3691_v41  ;;  %vm1629_vm3 = vweird.f32 %v2267_v43 }
 0x190   :  { %v1625_v44 = vsub.f32 1.0, %v1624_v56  ;;  %v1916_v60 = vmul.f32 %v2263_v29, %v1621_v23  ;;  %v3927_v8 = vpop.f32.mrf.mxu2  ;;  %2278 = vtanh.f32 %v3840_v51  ;;  %v1409_v36 = vsub.f32 1.0, %v3892_v62 }
 0x191   :  { %v763_v32 = vpop.f32.mrf.mxu3  ;;  %v2273_v51 = vpop.eup %2272  ;;  %2280 = vrcp.f32 %v3921_v3  ;;  %v1385_v48 = vsel %vm3939_vm4, %v3731_v27, %v1381_v9  ;;  %v1401_v47 = vand.u32 2147483647, %v3691_v41  ;;  %v1885_v10 = vmul.f32 %v2271_v53, %v3666_v0 }
 0x192   :  { %v1932_v18 = vadd.f32 %v1916_v60, %v1900_v37  ;;  %v1626_v61 = vmul.f32 %v2267_v43, %v1625_v44  ;;  %v1504_v29 = vadd.f32 %v1488_v33, %v763_v32  ;;  %v604_v59 = vpop.f32.mrf.mxu1  ;;  %vm1628_vm5 = vweird.f32 %v3859_v49  ;;  %v4488_v33 = vld [vmem:[#allocation31_spill] sm:$0xff] }
 0x193   :  { %vm1630_vm6 = vmor %vm1628_vm5, %vm1629_vm3  ;;  %v1635_v23 = vor.u32 1.1754944e-38, %v1634_v15  ;;  %2282 = vtanh.f32 %v3884_v31  ;;  %v3955_v37 = vor.u32 1.1754944e-38, %v1403_v63  ;;  %vm1633_vm7 = vcmp.eq.f32.partialorder %v1632_v11, 8.507059e+37 }
 0x194   :  { %v2275_v20 = vpop.eup %2274  ;;  %1948 = vst [vmem:[#allocation10 + $0x10] sm:$0xff] %v1932_v18  ;;  %v1627_v24 = vadd.f32 %v2267_v43, %v1626_v61  ;;  %v2021_v2 = vmul.f32 -1.442695, %v1504_v29  ;;  %v3960_v49 = vmul.f32 %v3828_v25, %v3765_v22  ;;  %v3966_v60 = vsel %vm3914_vm2, %v3878_v1, %v1385_v48 }
 0x195   :  { %v2277_v56 = vpop.eup %2276  ;;  %v3951_v58 = vadd.f32 1.0, %v2275_v20  ;;  %vm1398_vm8 = vweird.f32 %v3775_v12  ;;  %v1901_v31 = vadd.f32 %v1885_v10, %v3421_v46  ;;  %v1489_v53 = vadd.f32 %v604_v59, %v4488_v33 }
 0x196   :  { %v1639_v27 = vmul.f32 %v2277_v56, %v3909_v26  ;;  %v1631_v9 = vsel %vm1630_vm6, %v2267_v43, %v1627_v24  ;;  %2284 = vpow2.f32 %v2021_v2  ;;  %v2279_v0 = vpop.eup %2278  ;;  %v3973_v15 = vpop.f32.mrf.mxu0  ;;  %v1647_v21 = vand.u32 2147483647, %v3909_v26 }
 0x197   :  { %2286 = vrcp.f32 %v3951_v58  ;;  %v1636_v44 = vsel %vm1633_vm7, %v1635_v23, %v1631_v9  ;;  %v3975_v32 = vpop.eup %2280  ;;  %v1649_v1 = vand.u32 2147483648, %v3909_v26  ;;  %v1395_v46 = vmul.f32 %v3775_v12, %v1394_v54 }
 0x198   :  { %v1640_v43 = vsub.f32 1.0, %v1639_v27  ;;  %v1917_v55 = vmul.f32 %v2273_v51, %v1636_v44  ;;  %v3971_v11 = vpop.f32.mrf.mxu2  ;;  %2288 = vtanh.f32 %v3882_v28  ;;  %vm1397_vm9 = vweird.f32 %v3691_v41 }
 0x199   :  { %v766_v63 = vpop.f32.mrf.mxu3  ;;  %vm1644_vm10 = vweird.f32 %v2277_v56  ;;  %v2283_v6 = vpop.eup %2282  ;;  %v1424_v51 = vsub.f32 1.0, %v3960_v49  ;;  %v3987_v28 = vmul.f32 %v3872_v16, %v3469_v50  ;;  %v1886_v48 = vmul.f32 %v2279_v0, %v3697_v19  ;;  %vm4016_vm15 = vmor %vm1397_vm9, %vm1398_vm8  ;;  %v4502_v49 = vld [vmem:[#allocation40_spill] sm:$0xff] }
 0x19a   :  { %v1933_v18 = vadd.f32 %v1917_v55, %v1901_v31  ;;  %v1641_v61 = vmul.f32 %v2277_v56, %v1640_v43  ;;  %v1505_v29 = vadd.f32 %v1489_v53, %v766_v63  ;;  %v607_v59 = vpop.f32.mrf.mxu1  ;;  %v1416_v45 = vand.u32 2147483647, %v3709_v7  ;;  %v4489_v43 = vld [vmem:[#allocation35_spill] sm:$0xff] }
 0x19b   :  { %vm1643_vm11 = vweird.f32 %v3909_v26  ;;  %v1418_v24 = vand.u32 2147483648, %v3709_v7  ;;  %v1650_v27 = vor.u32 1.1754944e-38, %v1649_v1  ;;  %2290 = vtanh.f32 %v3929_v57 }
 0x19c   :  { %v2285_v20 = vpop.eup %2284  ;;  %1949 = vst [vmem:[#allocation10 + $0x18] sm:$0xff] %v1933_v18  ;;  %v1642_v54 = vadd.f32 %v2277_v56, %v1641_v61  ;;  %v2022_v10 = vmul.f32 -1.442695, %v1505_v29  ;;  %vm1645_vm12 = vmor %vm1643_vm11, %vm1644_vm10  ;;  %v3998_v50 = vadd.f32 %v3775_v12, %v1395_v46  ;;  %vm1648_vm13 = vcmp.eq.f32.partialorder %v1647_v21, 8.507059e+37 }
 0x19d   :  { %v2287_v2 = vpop.eup %2286  ;;  %v3993_v23 = vadd.f32 1.0, %v2285_v20  ;;  %v2014_v9 = vmul.f32 -1.442695, %v3500_v40  ;;  %v1902_v0 = vadd.f32 %v1886_v48, %v3506_v5  ;;  %v1490_v55 = vadd.f32 %v607_v59, %v4489_v43 }
 0x19e   :  { %v1654_v19 = vmul.f32 %v2287_v2, %v3951_v58  ;;  %v1646_v16 = vsel %vm1645_vm12, %v2277_v56, %v1642_v54  ;;  %2292 = vpow2.f32 %v2022_v10  ;;  %v2289_v26 = vpop.eup %2288  ;;  %v4006_v53 = vpop.f32.mrf.mxu0  ;;  %v1662_v56 = vand.u32 2147483647, %v3951_v58 }
 0x19f   :  { %2294 = vrcp.f32 %v3993_v23  ;;  %v1651_v44 = vsel %vm1648_vm13, %v1650_v27, %v1646_v16  ;;  %v1664_v21 = vand.u32 2147483648, %v3951_v58  ;;  %v4010_v1 = vor.u32 1.1754944e-38, %v1418_v24 }
 0x1a0   :  { %v1655_v31 = vsub.f32 1.0, %v1654_v19  ;;  %2296 = vtanh.f32 %v3927_v8  ;;  %v1918_v57 = vmul.f32 %v2283_v6, %v1651_v44  ;;  %v672_v33 = vpop.f32.mrf.mxu2  ;;  %vm1659_vm14 = vweird.f32 %v2287_v2 }
 0x1a1   :  { %2298 = vtanh.f32 %v672_v33  ;;  %v769_v40 = vpop.f32.mrf.mxu3  ;;  %vm4022_vm0 = vcmp.eq.f32.partialorder %v1401_v47, 8.507059e+37  ;;  %v2291_v29 = vpop.eup %2290  ;;  %v4027_v59 = vadd.f32 1.0, %v3918_v52  ;;  %v1887_v6 = vmul.f32 %v2289_v26, %v3739_v30 }
 0x1a2   :  { %v1934_v5 = vadd.f32 %v1918_v57, %v1902_v0  ;;  %v1656_v63 = vmul.f32 %v2287_v2, %v1655_v31  ;;  %v1506_v46 = vadd.f32 %v1490_v55, %v769_v40  ;;  %v610_v18 = vpop.f32.mrf.mxu1  ;;  %2300 = vpow2.f32 %v2014_v9  ;;  %v4494_v9 = vld [vmem:[#allocation38_spill] sm:$0xff] }
 0x1a3   :  { %v1400_v48 = vsel %vm4016_vm15, %v3775_v12, %v3998_v50  ;;  %2302 = vtanh.f32 %v3971_v11  ;;  %vm1658_vm1 = vweird.f32 %v3951_v58  ;;  %v4038_v52 = vmul.f32 %v3975_v32, %v3921_v3 }
 0x1a4   :  { %v2293_v20 = vpop.eup %2292  ;;  %1950 = vst [vmem:[#allocation10 + $0x20] sm:$0xff] %v1934_v5  ;;  %v1657_v41 = vadd.f32 %v2287_v2, %v1656_v63  ;;  %v2023_v47 = vmul.f32 -1.442695, %v1506_v46  ;;  %vm1660_vm2 = vmor %vm1658_vm1, %vm1659_vm14  ;;  %v1665_v30 = vor.u32 1.1754944e-38, %v1664_v21  ;;  %2304 = vtanh.f32 %v3973_v15 }
 0x1a5   :  { %v2295_v54 = vpop.eup %2294  ;;  %v4040_v10 = vadd.f32 1.0, %v2293_v20  ;;  %vm1663_vm3 = vcmp.eq.f32.partialorder %v1662_v56, 8.507059e+37  ;;  %v1903_v27 = vadd.f32 %v1887_v6, %v3568_v17  ;;  %v1410_v19 = vmul.f32 %v3781_v42, %v1409_v36 }
 0x1a6   :  { %v2297_v12 = vpop.eup %2296  ;;  %v1669_v24 = vmul.f32 %v2295_v54, %v3993_v23  ;;  %v1661_v11 = vsel %vm1660_vm2, %v2287_v2, %v1657_v41  ;;  %2306 = vpow2.f32 %v2023_v47  ;;  %v1491_v0 = vadd.f32 %v610_v18, %v4494_v9  ;;  %v4052_v2 = vpop.f32.mrf.mxu0 }
 0x1a7   :  { %v2299_v58 = vpop.eup %2298  ;;  %2308 = vrcp.f32 %v4040_v10  ;;  %v1666_v50 = vsel %vm1663_vm3, %v1665_v30, %v1661_v11  ;;  %vm1674_vm4 = vweird.f32 %v2295_v54  ;;  %v1677_v17 = vand.u32 2147483647, %v3993_v23 }
 0x1a8   :  { %v1670_v16 = vsub.f32 1.0, %v1669_v24  ;;  %v1919_v26 = vmul.f32 %v2291_v29, %v1666_v50  ;;  %v1890_v15 = vmul.f32 %v2299_v58, %v3898_v4  ;;  %v675_v44 = vpop.f32.mrf.mxu2  ;;  %v2301_v31 = vpop.eup %2300  ;;  %v1679_v57 = vand.u32 2147483648, %v3993_v23 }
 0x1a9   :  { %2310 = vtanh.f32 %v675_v44  ;;  %v772_v43 = vpop.f32.mrf.mxu3  ;;  %vm1412_vm5 = vweird.f32 %v3709_v7  ;;  %v2303_v62 = vpop.eup %2302  ;;  %v1888_v40 = vmul.f32 %v2297_v12, %v3790_v13  ;;  %v4065_v5 = vsel %vm4022_vm0, %v3955_v37, %v1400_v48 }
 0x1aa   :  { %v1935_v36 = vadd.f32 %v1919_v26, %v1903_v27  ;;  %v4058_v55 = vadd.f32 %v1890_v15, %v3707_v14  ;;  %v1671_v4 = vmul.f32 %v2295_v54, %v1670_v16  ;;  %v1507_v33 = vadd.f32 %v1491_v0, %v772_v43  ;;  %v613_v56 = vpop.f32.mrf.mxu1  ;;  %v2305_v21 = vpop.eup %2304 }
 0x1ab   :  { %2312 = vrcp.f32 %v4027_v59  ;;  %vm1413_vm6 = vweird.f32 %v3781_v42  ;;  %v1439_v46 = vsub.f32 1.0, %v4038_v52  ;;  %vm1673_vm7 = vweird.f32 %v3993_v23 }
 0x1ac   :  { %v2307_v63 = vpop.eup %2306  ;;  %1951 = vst [vmem:[#allocation10 + $0x28] sm:$0xff] %v1935_v36  ;;  %v1672_v14 = vadd.f32 %v2295_v54, %v1671_v4  ;;  %v2024_v18 = vmul.f32 -1.442695, %v1507_v33  ;;  %vm1675_vm8 = vmor %vm1673_vm7, %vm1674_vm4  ;;  %v1680_v13 = vor.u32 1.1754944e-38, %v1679_v57  ;;  %2314 = vtanh.f32 %v4006_v53 }
 0x1ad   :  { %v2309_v8 = vpop.eup %2308  ;;  %v4070_v29 = vadd.f32 1.0, %v2307_v63  ;;  %v4075_v37 = vadd.f32 %v3781_v42, %v1410_v19  ;;  %vm1678_vm9 = vcmp.eq.f32.partialorder %v1677_v17, 8.507059e+37  ;;  %v4078_v20 = vadd.f32 1.0, %v2301_v31  ;;  %v4495_v19 = vld [vmem:[#allocation16_spill] sm:$0xff]  ;;  %vm4097_vm11 = vmor %vm1412_vm5, %vm1413_vm6 }
 0x1ae   :  { %v1684_v61 = vmul.f32 %v2309_v8, %v4040_v10  ;;  %v1676_v6 = vsel %vm1675_vm8, %v2295_v54, %v1672_v14  ;;  %2316 = vpow2.f32 %v2024_v18  ;;  %v1904_v23 = vadd.f32 %v1888_v40, %v3624_v34  ;;  %v4084_v11 = vpop.f32.mrf.mxu0 }
 0x1af   :  { %v2311_v48 = vpop.eup %2310  ;;  %2318 = vrcp.f32 %v4070_v29  ;;  %v1681_v41 = vsel %vm1678_vm9, %v1680_v13, %v1676_v6  ;;  %v1492_v12 = vadd.f32 %v613_v56, %v3156_v39  ;;  %vm1689_vm10 = vweird.f32 %v2309_v8  ;;  %v4500_v56 = vld [vmem:[#allocation30_spill] sm:$0xff]  ;;  %v4501_v13 = vld [vmem:[#allocation39_spill] sm:$0xff] }
 0x1b0   :  { %v1685_v47 = vsub.f32 1.0, %v1684_v61  ;;  %v1920_v30 = vmul.f32 %v2305_v21, %v1681_v41  ;;  %v1891_v53 = vmul.f32 %v2311_v48, %v3966_v60  ;;  %v678_v24 = vpop.f32.mrf.mxu2  ;;  %v1692_v58 = vand.u32 2147483647, %v4040_v10 }
 0x1b1   :  { %v4086_v54 = vpop.eup %2312  ;;  %v1694_v27 = vand.u32 2147483648, %v4040_v10  ;;  %2320 = vtanh.f32 %v678_v24  ;;  %v775_v34 = vpop.f32.mrf.mxu3  ;;  %vm4103_vm12 = vcmp.eq.f32.partialorder %v1416_v45, 8.507059e+37  ;;  %v1889_v44 = vmul.f32 %v2303_v62, %v3833_v38 }
 0x1b2   :  { %v1936_v50 = vadd.f32 %v1920_v30, %v1904_v23  ;;  %v4091_v16 = vadd.f32 %v1891_v53, %v4495_v19  ;;  %v1686_v26 = vmul.f32 %v2309_v8, %v1685_v47  ;;  %v1508_v60 = vadd.f32 %v1492_v12, %v775_v34  ;;  %v616_v15 = vpop.f32.mrf.mxu1  ;;  %v2315_v0 = vpop.eup %2314 }
 0x1b3   :  { %v1415_v31 = vsel %vm4097_vm11, %v3781_v42, %v4075_v37  ;;  %v1431_v17 = vand.u32 2147483647, %v3765_v22  ;;  %v1433_v57 = vand.u32 2147483648, %v3765_v22  ;;  %2322 = vrcp.f32 %v4078_v20 }
 0x1b4   :  { %v2317_v43 = vpop.eup %2316  ;;  %1952 = vst [vmem:[#allocation10 + $0x30] sm:$0xff] %v1936_v50  ;;  %v1687_v7 = vadd.f32 %v2309_v8, %v1686_v26  ;;  %vm1688_vm13 = vweird.f32 %v4040_v10  ;;  %v2025_v45 = vmul.f32 -1.442695, %v1508_v60  ;;  %v4118_v38 = vmul.f32 %v4086_v54, %v4027_v59 }
 0x1b5   :  { %v2319_v36 = vpop.eup %2318  ;;  %v4120_v62 = vadd.f32 1.0, %v2317_v43  ;;  %vm1690_vm14 = vmor %vm1688_vm13, %vm1689_vm10  ;;  %v1695_v42 = vor.u32 1.1754944e-38, %v1694_v27  ;;  %2324 = vtanh.f32 %v4052_v2  ;;  %vm1427_vm15 = vweird.f32 %v3765_v22 }
 0x1b6   :  { %v1699_v4 = vmul.f32 %v2319_v36, %v4070_v29  ;;  %v1691_v33 = vsel %vm1690_vm14, %v2309_v8, %v1687_v7  ;;  %vm1693_vm0 = vcmp.eq.f32.partialorder %v1692_v58, 8.507059e+37  ;;  %2326 = vpow2.f32 %v2025_v45 }
 0x1b7   :  { %v2321_v10 = vpop.eup %2320  ;;  %v1905_v21 = vadd.f32 %v1889_v44, %v4500_v56  ;;  %2328 = vrcp.f32 %v4120_v62  ;;  %v1696_v40 = vsel %vm1693_vm0, %v1695_v42, %v1691_v33  ;;  %v1425_v63 = vmul.f32 %v3828_v25, %v1424_v51 }
 0x1b8   :  { %v1700_v14 = vsub.f32 1.0, %v1699_v4  ;;  %v1921_v18 = vmul.f32 %v2315_v0, %v1696_v40  ;;  %v1892_v2 = vmul.f32 %v2321_v10, %v4065_v5  ;;  %v1493_v37 = vadd.f32 %v616_v15, %v4501_v13  ;;  %v681_v61 = vpop.f32.mrf.mxu2  ;;  %v840_v5 = vpop.f32.mrf.mxu0 }
 0x1b9   :  { %vm1704_vm1 = vweird.f32 %v2319_v36  ;;  %v1707_v8 = vand.u32 2147483647, %v4070_v29  ;;  %v1709_v6 = vand.u32 2147483648, %v4070_v29  ;;  %2330 = vtanh.f32 %v681_v61  ;;  %v778_v48 = vpop.f32.mrf.mxu3  ;;  %v4135_v23 = vpop.eup %2322 }
 0x1ba   :  { %v1937_v41 = vadd.f32 %v1921_v18, %v1905_v21  ;;  %v4138_v47 = vadd.f32 %v1892_v2, %v4502_v49  ;;  %v1701_v51 = vmul.f32 %v2319_v36, %v1700_v14  ;;  %v1509_v30 = vadd.f32 %v1493_v37, %v778_v48  ;;  %v619_v53 = vpop.f32.mrf.mxu1  ;;  %v4508_v21 = vld [vmem:[#allocation42_spill] sm:$0xff] }
 0x1bb   :  { %v2325_v12 = vpop.eup %2324  ;;  %v1420_v24 = vsel %vm4103_vm12, %v4010_v1, %v1415_v31  ;;  %v1426_v58 = vadd.f32 %v3828_v25, %v1425_v63  ;;  %vm1428_vm2 = vweird.f32 %v3828_v25  ;;  %vm4145_vm3 = vcmp.eq.f32.partialorder %v1431_v17, 8.507059e+37 }
 0x1bc   :  { %v1434_v34 = vor.u32 1.1754944e-38, %v1433_v57  ;;  %v2327_v50 = vpop.eup %2326  ;;  %v1454_v19 = vsub.f32 1.0, %v4118_v38  ;;  %1953 = vst [vmem:[#allocation10 + $0x38] sm:$0xff] %v1937_v41  ;;  %v1702_v26 = vadd.f32 %v2319_v36, %v1701_v51  ;;  %vm1703_vm4 = vweird.f32 %v4070_v29  ;;  %vm4161_vm7 = vmor %vm1427_vm15, %vm1428_vm2 }
 0x1bd   :  { %v2026_v60 = vmul.f32 -1.442695, %v1509_v30  ;;  %v2329_v15 = vpop.eup %2328  ;;  %v4151_v39 = vadd.f32 1.0, %v2327_v50  ;;  %vm1705_vm5 = vmor %vm1703_vm4, %vm1704_vm1  ;;  %v1710_v1 = vor.u32 1.1754944e-38, %v1709_v6  ;;  %2332 = vtanh.f32 %v4084_v11  ;;  %v4511_v50 = vld [vmem:[#allocation15_spill] sm:$0xff] }
 0x1be   :  { %v1446_v9 = vand.u32 2147483647, %v3921_v3  ;;  %v1714_v0 = vmul.f32 %v2329_v15, %v4120_v62  ;;  %v1706_v44 = vsel %vm1705_vm5, %v2319_v36, %v1702_v26  ;;  %vm1708_vm6 = vcmp.eq.f32.partialorder %v1707_v8, 8.507059e+37  ;;  %v4507_v36 = vld [vmem:[#allocation41_spill] sm:$0xff] }
 0x1bf   :  { %2334 = vpow2.f32 %v2026_v60  ;;  %v2331_v31 = vpop.eup %2330  ;;  %v1711_v17 = vsel %vm1708_vm6, %v1710_v1, %v1706_v44  ;;  %v1430_v11 = vsel %vm4161_vm7, %v3828_v25, %v1426_v58  ;;  %v1448_v57 = vand.u32 2147483648, %v3921_v3 }
 0x1c0   :  { %2336 = vrcp.f32 %v4151_v39  ;;  %v1715_v43 = vsub.f32 1.0, %v1714_v0  ;;  %v1922_v7 = vmul.f32 %v2325_v12, %v1711_v17  ;;  %v1893_v45 = vmul.f32 %v2331_v31, %v1420_v24  ;;  %v684_v22 = vpop.f32.mrf.mxu2  ;;  %v843_v48 = vpop.f32.mrf.mxu0 }
 0x1c1   :  { %v1494_v42 = vadd.f32 %v619_v53, %v4507_v36  ;;  %vm1719_vm8 = vweird.f32 %v2329_v15  ;;  %v1722_v4 = vand.u32 2147483647, %v4120_v62  ;;  %v1724_v33 = vand.u32 2147483648, %v4120_v62  ;;  %v781_v10 = vpop.f32.mrf.mxu3 }
 0x1c2   :  { %2338 = vtanh.f32 %v684_v22  ;;  %v1938_v56 = vadd.f32 %v1922_v7, %v4058_v55  ;;  %v4175_v40 = vadd.f32 %v1893_v45, %v4508_v21  ;;  %v1716_v25 = vmul.f32 %v2329_v15, %v1715_v43  ;;  %v622_v14 = vpop.f32.mrf.mxu1 }
 0x1c3   :  { %v1510_v63 = vadd.f32 %v1494_v42, %v781_v10  ;;  %vm1442_vm9 = vweird.f32 %v3921_v3  ;;  %v2333_v18 = vpop.eup %2332  ;;  %v4180_v2 = vmul.f32 %v4135_v23, %v4078_v20  ;;  %v1440_v13 = vmul.f32 %v3975_v32, %v1439_v46 }
 0x1c4   :  { %vm1443_vm10 = vweird.f32 %v3975_v32  ;;  %v4186_v55 = vor.u32 1.1754944e-38, %v1448_v57  ;;  %1954 = vst [vmem:[#allocation10 + $0x40] sm:$0xff] %v1938_v56  ;;  %v1717_v61 = vadd.f32 %v2329_v15, %v1716_v25  ;;  %vm1718_vm11 = vweird.f32 %v4120_v62 }
 0x1c5   :  { %v2335_v37 = vpop.eup %2334  ;;  %v1435_v8 = vsel %vm4145_vm3, %v1434_v34, %v1430_v11  ;;  %v2027_v6 = vmul.f32 -1.442695, %v1510_v63  ;;  %vm1720_vm12 = vmor %vm1718_vm11, %vm1719_vm8  ;;  %v1725_v52 = vor.u32 1.1754944e-38, %v1724_v33  ;;  %2340 = vtanh.f32 %v840_v5 }
 0x1c6   :  { %v2337_v41 = vpop.eup %2336  ;;  %v4191_v49 = vadd.f32 1.0, %v2335_v37  ;;  %v1461_v46 = vand.u32 2147483647, %v4027_v59  ;;  %v1721_v30 = vsel %vm1720_vm12, %v2329_v15, %v1717_v61  ;;  %vm1723_vm13 = vcmp.eq.f32.partialorder %v1722_v4, 8.507059e+37  ;;  %vm4215_vm0 = vmor %vm1442_vm9, %vm1443_vm10 }
 0x1c7   :  { %v1729_v51 = vmul.f32 %v2337_v41, %v4151_v39  ;;  %2342 = vpow2.f32 %v2027_v6  ;;  %vm4196_vm14 = vcmp.eq.f32.partialorder %v1446_v9, 8.507059e+37  ;;  %v1726_v12 = vsel %vm1723_vm13, %v1725_v52, %v1721_v30 }
 0x1c8   :  { %v2339_v53 = vpop.eup %2338  ;;  %2344 = vrcp.f32 %v4191_v49  ;;  %v1441_v24 = vadd.f32 %v3975_v32, %v1440_v13  ;;  %v1463_v58 = vand.u32 2147483648, %v4027_v59  ;;  %v1923_v27 = vmul.f32 %v2333_v18, %v1726_v12  ;;  %v687_v60 = vpop.f32.mrf.mxu2  ;;  %v4516_v18 = vld [vmem:[#allocation25_spill] sm:$0xff] }
 0x1c9   :  { %v1730_v5 = vsub.f32 1.0, %v1729_v51  ;;  %v1894_v34 = vmul.f32 %v2339_v53, %v1435_v8  ;;  %v1495_v26 = vadd.f32 %v622_v14, %v4511_v50  ;;  %vm1734_vm15 = vweird.f32 %v2337_v41  ;;  %v784_v9 = vpop.f32.mrf.mxu3 }
 0x1ca   :  { %v1737_v15 = vand.u32 2147483647, %v4151_v39  ;;  %v1739_v1 = vand.u32 2147483648, %v4151_v39  ;;  %2346 = vtanh.f32 %v687_v60  ;;  %v1939_v0 = vadd.f32 %v1923_v27, %v4091_v16  ;;  %v625_v43 = vpop.f32.mrf.mxu1 }
 0x1cb   :  { %v4208_v44 = vadd.f32 %v1894_v34, %v3907_v35  ;;  %v1731_v29 = vmul.f32 %v2337_v41, %v1730_v5  ;;  %v1511_v31 = vadd.f32 %v1495_v26, %v784_v9  ;;  %v2341_v17 = vpop.eup %2340  ;;  %v1469_v11 = vsub.f32 1.0, %v4180_v2  ;;  %v4519_v9 = vld [vmem:[#allocation26_spill] sm:$0xff] }
 0x1cc   :  { %v1455_v16 = vmul.f32 %v4086_v54, %v1454_v19  ;;  %vm1457_vm1 = vweird.f32 %v4027_v59  ;;  %v4223_v35 = vor.u32 1.1754944e-38, %v1463_v58  ;;  %1955 = vst [vmem:[#allocation10 + $0x48] sm:$0xff] %v1939_v0  ;;  %vm1733_vm2 = vweird.f32 %v4151_v39 }
 0x1cd   :  { %v2343_v7 = vpop.eup %2342  ;;  %v1732_v45 = vadd.f32 %v2337_v41, %v1731_v29  ;;  %v1445_v3 = vsel %vm4215_vm0, %v3975_v32, %v1441_v24  ;;  %v2028_v36 = vmul.f32 -1.442695, %v1511_v31  ;;  %vm1735_vm3 = vmor %vm1733_vm2, %vm1734_vm15  ;;  %v1740_v38 = vor.u32 1.1754944e-38, %v1739_v1  ;;  %v846_v32 = vpop.f32.mrf.mxu0 }
 0x1ce   :  { %v2345_v42 = vpop.eup %2344  ;;  %v4229_v22 = vadd.f32 1.0, %v2343_v7  ;;  %2348 = vtanh.f32 %v843_v48  ;;  %vm1458_vm4 = vweird.f32 %v4086_v54  ;;  %vm1738_vm5 = vcmp.eq.f32.partialorder %v1737_v15, 8.507059e+37 }
 0x1cf   :  { %v1744_v19 = vmul.f32 %v2345_v42, %v4191_v49  ;;  %v1736_v4 = vsel %vm1735_vm3, %v2337_v41, %v1732_v45  ;;  %2350 = vpow2.f32 %v2028_v36  ;;  %vm4234_vm6 = vcmp.eq.f32.partialorder %v1461_v46, 8.507059e+37  ;;  %vm4254_vm8 = vmor %vm1457_vm1, %vm1458_vm4 }
 0x1d0   :  { %v2347_v33 = vpop.eup %2346  ;;  %2352 = vrcp.f32 %v4229_v22  ;;  %v1741_v10 = vsel %vm1738_vm5, %v1740_v38, %v1736_v4  ;;  %v1450_v56 = vsel %vm4196_vm14, %v4186_v55, %v1445_v3  ;;  %v1456_v21 = vadd.f32 %v4086_v54, %v1455_v16  ;;  %v690_v13 = vpop.f32.mrf.mxu2  ;;  %v4520_v16 = vld [vmem:[#allocation22_spill] sm:$0xff] }
 0x1d1   :  { %v1745_v25 = vsub.f32 1.0, %v1744_v19  ;;  %v1924_v63 = vmul.f32 %v2341_v17, %v1741_v10  ;;  %v1895_v14 = vmul.f32 %v2347_v33, %v1450_v56  ;;  %v1496_v2 = vadd.f32 %v625_v43, %v4516_v18  ;;  %v787_v8 = vpop.f32.mrf.mxu3 }
 0x1d2   :  { %vm1749_vm7 = vweird.f32 %v2345_v42  ;;  %v1752_v37 = vand.u32 2147483647, %v4191_v49  ;;  %v1754_v61 = vand.u32 2147483648, %v4191_v49  ;;  %2354 = vtanh.f32 %v690_v13  ;;  %v628_v5 = vpop.f32.mrf.mxu1 }
 0x1d3   :  { %v1940_v6 = vadd.f32 %v1924_v63, %v4138_v47  ;;  %v4248_v48 = vadd.f32 %v1895_v14, %v3987_v28  ;;  %v1746_v55 = vmul.f32 %v2345_v42, %v1745_v25  ;;  %v1512_v41 = vadd.f32 %v1496_v2, %v787_v8 }
 0x1d4   :  { %v2349_v52 = vpop.eup %2348  ;;  %v1470_v51 = vmul.f32 %v4135_v23, %v1469_v11  ;;  %vm1472_vm9 = vweird.f32 %v4078_v20  ;;  %v1476_v47 = vand.u32 2147483647, %v4078_v20  ;;  %v1478_v28 = vand.u32 2147483648, %v4078_v20 }
 0x1d5   :  { %v2351_v30 = vpop.eup %2350  ;;  %1956 = vst [vmem:[#allocation10 + $0x50] sm:$0xff] %v1940_v6  ;;  %v1747_v62 = vadd.f32 %v2345_v42, %v1746_v55  ;;  %vm1748_vm10 = vweird.f32 %v4191_v49  ;;  %v1460_v59 = vsel %vm4254_vm8, %v4086_v54, %v1456_v21  ;;  %v2029_v53 = vmul.f32 -1.442695, %v1512_v41  ;;  %v849_v31 = vpop.f32.mrf.mxu0 }
 0x1d6   :  { %v2353_v12 = vpop.eup %2352  ;;  %v4266_v24 = vadd.f32 1.0, %v2351_v30  ;;  %vm1750_vm11 = vmor %vm1748_vm10, %vm1749_vm7  ;;  %v1755_v58 = vor.u32 1.1754944e-38, %v1754_v61  ;;  %2356 = vtanh.f32 %v846_v32  ;;  %vm1473_vm12 = vweird.f32 %v4135_v23 }
 0x1d7   :  { %v1759_v27 = vmul.f32 %v2353_v12, %v4229_v22  ;;  %v1751_v34 = vsel %vm1750_vm11, %v2345_v42, %v1747_v62  ;;  %vm1753_vm13 = vcmp.eq.f32.partialorder %v1752_v37, 8.507059e+37  ;;  %2358 = vpow2.f32 %v2029_v53  ;;  %vm4287_vm15 = vmor %vm1472_vm9, %vm1473_vm12  ;;  %v4525_v37 = vld [vmem:[#allocation29_spill] sm:$0xff] }
 0x1d8   :  { %v2355_v49 = vpop.eup %2354  ;;  %2360 = vrcp.f32 %v4266_v24  ;;  %v1756_v54 = vsel %vm1753_vm13, %v1755_v58, %v1751_v34  ;;  %v1465_v50 = vsel %vm4234_vm6, %v4223_v35, %v1460_v59  ;;  %v1471_v26 = vadd.f32 %v4135_v23, %v1470_v51  ;;  %v693_v29 = vpop.f32.mrf.mxu2 }
 0x1d9   :  { %v1760_v60 = vsub.f32 1.0, %v1759_v27  ;;  %v1925_v15 = vmul.f32 %v2349_v52, %v1756_v54  ;;  %v1896_v1 = vmul.f32 %v2355_v49, %v1465_v50  ;;  %v1497_v0 = vadd.f32 %v628_v5, %v4519_v9  ;;  %v790_v57 = vpop.f32.mrf.mxu3 }
 0x1da   :  { %vm1764_vm14 = vweird.f32 %v2353_v12  ;;  %v1767_v17 = vand.u32 2147483647, %v4229_v22  ;;  %v1769_v11 = vand.u32 2147483648, %v4229_v22  ;;  %2362 = vtanh.f32 %v693_v29 }
 0x1db   :  { %v1941_v43 = vadd.f32 %v1925_v15, %v4175_v40  ;;  %v4281_v35 = vadd.f32 %v1896_v1, %v4520_v16  ;;  %v1761_v7 = vmul.f32 %v2353_v12, %v1760_v60  ;;  %v1513_v45 = vadd.f32 %v1497_v0, %v790_v57 }
 0x1dc   :  { %v2357_v3 = vpop.eup %2356  ;;  %vm4291_vm0 = vcmp.eq.f32.partialorder %v1476_v47, 8.507059e+37  ;;  %vm1763_vm1 = vweird.f32 %v4229_v22  ;;  %v1475_v19 = vsel %vm4287_vm15, %v4135_v23, %v1471_v26  ;;  %v1770_v32 = vor.u32 1.1754944e-38, %v1769_v11 }
 0x1dd   :  { %v2359_v38 = vpop.eup %2358  ;;  %1957 = vst [vmem:[#allocation10 + $0x58] sm:$0xff] %v1941_v43  ;;  %v1762_v40 = vadd.f32 %v2353_v12, %v1761_v7  ;;  %v2030_v4 = vmul.f32 -1.442695, %v1513_v45  ;;  %vm1765_vm2 = vmor %vm1763_vm1, %vm1764_vm14  ;;  %v1479_v33 = vor.u32 1.1754944e-38, %v1478_v28  ;;  %2364 = vtanh.f32 %v849_v31  ;;  %v852_v6 = vpop.f32.mrf.mxu0 }
 0x1de   :  { %v2361_v39 = vpop.eup %2360  ;;  %v1576_v20 = vadd.f32 1.0, %v2359_v38  ;;  %vm1768_vm3 = vcmp.eq.f32.partialorder %v1767_v17, 8.507059e+37  ;;  %v1782_v18 = vand.u32 2147483647, %v4266_v24  ;;  %v1784_v2 = vand.u32 2147483648, %v4266_v24 }
 0x1df   :  { %v1774_v10 = vmul.f32 %v2361_v39, %v4266_v24  ;;  %v1766_v56 = vsel %vm1765_vm2, %v2353_v12, %v1762_v40  ;;  %2366 = vpow2.f32 %v2030_v4  ;;  %v1480_v25 = vsel %vm4291_vm0, %v1479_v33, %v1475_v19 }
 0x1e0   :  { %v2363_v21 = vpop.eup %2362  ;;  %2368 = vrcp.f32 %v1576_v20  ;;  %v1771_v22 = vsel %vm1768_vm3, %v1770_v32, %v1766_v56  ;;  %vm1779_vm4 = vweird.f32 %v2361_v39  ;;  %vm1778_vm5 = vweird.f32 %v4266_v24 }
 0x1e1   :  { %v1775_v23 = vsub.f32 1.0, %v1774_v10  ;;  %v1926_v63 = vmul.f32 %v2357_v3, %v1771_v22  ;;  %v1897_v14 = vmul.f32 %v2363_v21, %v1480_v25  ;;  %vm1780_vm6 = vmor %vm1778_vm5, %vm1779_vm4  ;;  %v1785_v47 = vor.u32 1.1754944e-38, %v1784_v2 }
 0x1e2   :  { %vm1783_vm7 = vcmp.eq.f32.partialorder %v1782_v18, 8.507059e+37  ;;  %2370 = vtanh.f32 %v852_v6  ;;  %v1799_v53 = vand.u32 2147483648, %v1576_v20  ;;  %v1797_v5 = vand.u32 2147483647, %v1576_v20 }
 0x1e3   :  { %v1942_v13 = vadd.f32 %v1926_v63, %v4208_v44  ;;  %v1913_v61 = vadd.f32 %v1897_v14, %v4525_v37  ;;  %v1776_v8 = vmul.f32 %v2361_v39, %v1775_v23  ;;  %v2365_v55 = vpop.eup %2364  ;;  %vm1793_vm9 = vweird.f32 %v1576_v20 }
 0x1e4   :  { %v1800_v54 = vor.u32 1.1754944e-38, %v1799_v53  ;;  %vm1798_vm11 = vcmp.eq.f32.partialorder %v1797_v5, 8.507059e+37 }
 0x1e5   :  { %v2367_v41 = vpop.eup %2366  ;;  %1958 = vst [vmem:[#allocation10 + $0x60] sm:$0xff] %v1942_v13  ;;  %v1777_v52 = vadd.f32 %v2361_v39, %v1776_v8  ;;  %v855_v34 = vpop.f32.mrf.mxu0 }
 0x1e6   :  { %v2369_v46 = vpop.eup %2368  ;;  %v1577_v51 = vadd.f32 1.0, %v2367_v41 }
 0x1e7   :  { %v1789_v28 = vmul.f32 %v2369_v46, %v1576_v20  ;;  %v1781_v30 = vsel %vm1780_vm6, %v2361_v39, %v1777_v52  ;;  %vm1794_vm8 = vweird.f32 %v2369_v46 }
 0x1e8   :  { %2372 = vrcp.f32 %v1577_v51  ;;  %v1786_v44 = vsel %vm1783_vm7, %v1785_v47, %v1781_v30  ;;  %v2371_v27 = vpop.eup %2370  ;;  %vm1795_vm10 = vmor %vm1793_vm9, %vm1794_vm8  ;;  %v1814_v9 = vand.u32 2147483648, %v1577_v51  ;;  %v1812_v29 = vand.u32 2147483647, %v1577_v51 }
 0x1e9   :  { %v1790_v62 = vsub.f32 1.0, %v1789_v28  ;;  %v1927_v59 = vmul.f32 %v2365_v55, %v1786_v44  ;;  %2374 = vtanh.f32 %v855_v34  ;;  %vm1808_vm13 = vweird.f32 %v1577_v51 }
 0x1ea   :  { %v1815_v11 = vor.u32 1.1754944e-38, %v1814_v9  ;;  %vm1813_vm15 = vcmp.eq.f32.partialorder %v1812_v29, 8.507059e+37 }
 0x1eb   :  { %v1943_v12 = vadd.f32 %v1927_v59, %v4248_v48  ;;  %v1791_v58 = vmul.f32 %v2369_v46, %v1790_v62 }
 0x1ed   :  { %1959 = vst [vmem:[#allocation10 + $0x68] sm:$0xff] %v1943_v12  ;;  %v1792_v24 = vadd.f32 %v2369_v46, %v1791_v58 }
 0x1ee   :  { %v2373_v49 = vpop.eup %2372 }
 0x1ef   :  { %v1804_v50 = vmul.f32 %v2373_v49, %v1577_v51  ;;  %v1796_v26 = vsel %vm1795_vm10, %v2369_v46, %v1792_v24  ;;  %vm1809_vm12 = vweird.f32 %v2373_v49  ;;  %v2375_v17 = vpop.eup %2374 }
 0x1f0   :  { %v1801_v60 = vsel %vm1798_vm11, %v1800_v54, %v1796_v26  ;;  %vm1810_vm14 = vmor %vm1808_vm13, %vm1809_vm12 }
 0x1f1   :  { %v1805_v15 = vsub.f32 1.0, %v1804_v50  ;;  %v1928_v1 = vmul.f32 %v2371_v27, %v1801_v60 }
 0x1f3   :  { %v1944_v48 = vadd.f32 %v1928_v1, %v4281_v35  ;;  %v1806_v0 = vmul.f32 %v2373_v49, %v1805_v15 }
 0x1f5   :  { %1960 = vst [vmem:[#allocation10 + $0x70] sm:$0xff] %v1944_v48  ;;  %v1807_v31 = vadd.f32 %v2373_v49, %v1806_v0 }
 0x1f7   :  { %v1811_v57 = vsel %vm1810_vm14, %v2373_v49, %v1807_v31 }
 0x1f8   :  { %v1816_v43 = vsel %vm1813_vm15, %v1815_v11, %v1811_v57 }
 0x1f9   :  { %v1929_v16 = vmul.f32 %v2375_v17, %v1816_v43 }
 0x1fb   :  { %v1945_v35 = vadd.f32 %v1929_v16, %v1913_v61 }
 0x1fd   :  { %1961 = vst [vmem:[#allocation10 + $0x78] sm:$0xff] %v1945_v35 }
 0x1fe   :  { %1974 = dma.vmem_to_hbm [thread:$0]  %s1967_s10, 2048, %s1969_s13, [#allocation4], %s2507_s23, %s2507_s23, %s2508_s24  }
 0x1ff   :  { %2504 = dma.done.wait [#allocation4], 2048  }
 0x200   :  { %2505 = vsyncadd [#allocation4], 4294965248 }
 0x201   :  { %1979 = vsyncpa [#allocation3], 1 }
 0x202   :  { %1980 = vsyncpa [#allocation6], 1 }
 0x203   :  { %1981 = vsyncpa [#allocation9], 1 }
 0x204   :  { %1982 = vsyncpa [#allocation4], 1 }

</bundles_post_ra>
